<compile_context>
chip_gen: v5e
topology: v5e:2x2
jax: 0.10.0
libtpu: 0.0.40
codegen_flags: <defaults>
</compile_context>

<pallas_src>
import functools

import jax
import jax.numpy as jnp
from jax.experimental import pallas as pl
from jax.experimental.pallas import tpu as pltpu

_EPS = 1e-5
_LANES = 128


def _round_up(x, m):
    return (x + m - 1) // m * m


# ---------------------------------------------------------------------------
# Shared in-kernel helpers
# ---------------------------------------------------------------------------
def _zero_halo(xbuf_ref, ext, m_out):
    """Zero the head/tail halo rows of the flattened-activation scratch."""
    lanes = xbuf_ref.shape[1]
    z = jnp.zeros((ext, lanes), xbuf_ref.dtype)
    xbuf_ref[0:ext, :] = z
    xbuf_ref[ext + m_out:ext + m_out + ext, :] = z


def _accum_9taps(xbuf_ref, w_ref, *, m_out, wp, ext):
    """9 shifted (m_out, Cin) @ (Cin, 128) MXU matmuls over the halo'd scratch."""
    acc = None
    for kh in range(3):
        for kw in range(3):
            start = ext + (kh - 1) * wp + (kw - 1)
            xt = xbuf_ref[pl.ds(start, m_out), :]
            part = jnp.dot(xt, w_ref[kh * 3 + kw],
                           preferred_element_type=jnp.float32)
            acc = part if acc is None else acc + part
    return acc


# ---------------------------------------------------------------------------
# Kernel A1: stride-1 conv straight from the (flattened, spatially padded) input.
# Output: raw conv values on the padded grid (borders zeroed) + BN partial stats.
# ---------------------------------------------------------------------------
def _conv9_input_kernel(x_ref, w_ref, mask_ref, out_ref, stats_ref, xbuf_ref,
                        *, m_out, wp, ext):
    _zero_halo(xbuf_ref, ext, m_out)
    xbuf_ref[pl.ds(ext, m_out), :] = x_ref[0]
    acc = _accum_9taps(xbuf_ref, w_ref, m_out=m_out, wp=wp, ext=ext)
    acc = acc * mask_ref[...]                       # zero the border (invalid) rows
    out_ref[0] = acc.astype(out_ref.dtype)
    s = jnp.sum(acc, axis=0, keepdims=True)
    ss = jnp.sum(acc * acc, axis=0, keepdims=True)
    stats_ref[0] = jnp.concatenate([s, ss], axis=0)


def _conv9_input(xflat, w_taps, mask, *, wp):
    n, m_out, cin = xflat.shape
    ext = wp + 1
    kernel = functools.partial(_conv9_input_kernel, m_out=m_out, wp=wp, ext=ext)
    return pl.pallas_call(
        kernel,
        out_shape=(jax.ShapeDtypeStruct((n, m_out, _LANES), jnp.bfloat16),
                   jax.ShapeDtypeStruct((n, 2, _LANES), jnp.float32)),
        grid=(n,),
        in_specs=[pl.BlockSpec((1, m_out, cin), lambda i: (i, 0, 0)),
                  pl.BlockSpec((9, cin, _LANES), lambda i: (0, 0, 0)),
                  pl.BlockSpec((m_out, 1), lambda i: (0, 0))],
        out_specs=(pl.BlockSpec((1, m_out, _LANES), lambda i: (i, 0, 0)),
                   pl.BlockSpec((1, 2, _LANES), lambda i: (i, 0, 0))),
        scratch_shapes=[pltpu.VMEM((m_out + 2 * ext, cin), jnp.bfloat16)],
        compiler_params=pltpu.CompilerParams(
            dimension_semantics=("parallel",)),
    )(xflat, w_taps, mask)


# ---------------------------------------------------------------------------
# Kernel C: stride-1 conv whose input is the PREVIOUS conv's raw bf16 output;
# folded BN (scale/shift) + ReLU + border masking are applied in-register before
# the 9 taps.  Output: raw conv values on the same padded grid + BN partial stats.
# ---------------------------------------------------------------------------
def _conv9_bnrelu_kernel(x_ref, scale_ref, shift_ref, w_ref, mask_ref,
                         out_ref, stats_ref, xbuf_ref, *, m_out, wp, ext):
    _zero_halo(xbuf_ref, ext, m_out)
    x = x_ref[0].astype(jnp.float32)
    mask = mask_ref[...]
    act = jnp.maximum(x * scale_ref[...] + shift_ref[...], 0.0) * mask
    xbuf_ref[pl.ds(ext, m_out), :] = act.astype(xbuf_ref.dtype)
    acc = _accum_9taps(xbuf_ref, w_ref, m_out=m_out, wp=wp, ext=ext)
    out_ref[0] = acc.astype(out_ref.dtype)
    accm = acc * mask
    s = jnp.sum(accm, axis=0, keepdims=True)
    ss = jnp.sum(accm * acc, axis=0, keepdims=True)   # mask is 0/1 -> mask * acc^2
    stats_ref[0] = jnp.concatenate([s, ss], axis=0)


def _conv9_bnrelu(x_prev, scale, shift, w_taps, mask, *, wp):
    n, m_out, lanes = x_prev.shape
    ext = wp + 1
    kernel = functools.partial(_conv9_bnrelu_kernel, m_out=m_out, wp=wp, ext=ext)
    return pl.pallas_call(
        kernel,
        out_shape=(jax.ShapeDtypeStruct((n, m_out, _LANES), jnp.bfloat16),
                   jax.ShapeDtypeStruct((n, 2, _LANES), jnp.float32)),
        grid=(n,),
        in_specs=[pl.BlockSpec((1, m_out, lanes), lambda i: (i, 0, 0)),
                  pl.BlockSpec((1, _LANES), lambda i: (0, 0)),
                  pl.BlockSpec((1, _LANES), lambda i: (0, 0)),
                  pl.BlockSpec((9, lanes, _LANES), lambda i: (0, 0, 0)),
                  pl.BlockSpec((m_out, 1), lambda i: (0, 0))],
        out_specs=(pl.BlockSpec((1, m_out, _LANES), lambda i: (i, 0, 0)),
                   pl.BlockSpec((1, 2, _LANES), lambda i: (i, 0, 0))),
        scratch_shapes=[pltpu.VMEM((m_out + 2 * ext, _LANES), jnp.bfloat16)],
        compiler_params=pltpu.CompilerParams(
            dimension_semantics=("parallel",)),
    )(x_prev, scale, shift, w_taps, mask)


# ---------------------------------------------------------------------------
# Kernel A2: stride != 1 conv1 via per-image im2col matmul; the result is
# scattered directly into conv2's padded-grid layout (borders zero).
# ---------------------------------------------------------------------------
def _conv_im2col_kernel(xcol_ref, w_ref, out_ref, stats_ref, *, ho, wo):
    wp = wo + 2
    acc = jnp.dot(xcol_ref[0], w_ref[...], preferred_element_type=jnp.float32)
    out_ref[...] = jnp.zeros_like(out_ref)
    for hh in range(ho):
        dst = (hh + 1) * wp + 1
        out_ref[0, dst:dst + wo, :] = (
            acc[hh * wo:(hh + 1) * wo, :].astype(out_ref.dtype))
    s = jnp.sum(acc, axis=0, keepdims=True)
    ss = jnp.sum(acc * acc, axis=0, keepdims=True)
    stats_ref[0] = jnp.concatenate([s, ss], axis=0)


def _conv_im2col(x_col, w_mat, *, ho, wo):
    n, hw, kp = x_col.shape
    m2 = (ho + 2) * (wo + 2)
    kernel = functools.partial(_conv_im2col_kernel, ho=ho, wo=wo)
    return pl.pallas_call(
        kernel,
        out_shape=(jax.ShapeDtypeStruct((n, m2, _LANES), jnp.bfloat16),
                   jax.ShapeDtypeStruct((n, 2, _LANES), jnp.float32)),
        grid=(n,),
        in_specs=[pl.BlockSpec((1, hw, kp), lambda i: (i, 0, 0)),
                  pl.BlockSpec((kp, _LANES), lambda i: (0, 0))],
        out_specs=(pl.BlockSpec((1, m2, _LANES), lambda i: (i, 0, 0)),
                   pl.BlockSpec((1, 2, _LANES), lambda i: (i, 0, 0))),
        compiler_params=pltpu.CompilerParams(
            dimension_semantics=("parallel",)),
    )(x_col, w_mat)


# ---------------------------------------------------------------------------
# Kernel D: folded BN2 + residual (at its natural narrow shape) + ReLU, writing
# the unpadded NHWC output directly.
# ---------------------------------------------------------------------------
def _bn_res_relu_kernel(y_ref, scale_ref, shift_ref, res_ref, out_ref,
                        *, ho, wo, cout):
    wp = wo + 2
    y = y_ref[0].astype(jnp.float32) * scale_ref[...] + shift_ref[...]
    for hh in range(ho):
        src = (hh + 1) * wp + 1
        row = y[src:src + wo, :cout]
        r = res_ref[0, hh].astype(jnp.float32)
        out_ref[0, hh] = jnp.maximum(row + r, 0.0)


def _bn_residual_relu(conv_raw, scale, shift, res, *, ho, wo, cout):
    n, m2, _ = conv_raw.shape
    kernel = functools.partial(_bn_res_relu_kernel, ho=ho, wo=wo, cout=cout)
    return pl.pallas_call(
        kernel,
        out_shape=jax.ShapeDtypeStruct((n, ho, wo, cout), jnp.float32),
        grid=(n,),
        in_specs=[pl.BlockSpec((1, m2, _LANES), lambda i: (i, 0, 0)),
                  pl.BlockSpec((1, _LANES), lambda i: (0, 0)),
                  pl.BlockSpec((1, _LANES), lambda i: (0, 0)),
                  pl.BlockSpec((1, ho, wo, cout), lambda i: (i, 0, 0, 0))],
        out_specs=pl.BlockSpec((1, ho, wo, cout), lambda i: (i, 0, 0, 0)),
        compiler_params=pltpu.CompilerParams(
            dimension_semantics=("parallel",)),
    )(conv_raw, scale, shift, res)


# ---------------------------------------------------------------------------
# O(C) / layout glue (plain JAX)
# ---------------------------------------------------------------------------
def _interior_mask(hp, wp):
    """(hp*wp, 1) f32 mask: 1 at interior (valid conv output) grid rows."""
    idx = jnp.arange(hp * wp)
    hpos = idx // wp
    wpos = idx % wp
    valid = (hpos >= 1) & (hpos <= hp - 2) & (wpos >= 1) & (wpos <= wp - 2)
    return valid.astype(jnp.float32).reshape(hp * wp, 1)


def _taps_from_oihw(w_oihw, cin_pad, cout_pad):
    """(Cout, Cin, 3, 3) -> (9, cin_pad, cout_pad), zero padded, bf16."""
    cout, cin = w_oihw.shape[0], w_oihw.shape[1]
    w = jnp.transpose(w_oihw, (2, 3, 1, 0)).reshape(9, cin, cout)
    w = jnp.pad(w, ((0, 0), (0, cin_pad - cin), (0, cout_pad - cout)))
    return w.astype(jnp.bfloat16)


def _mat_from_oihw(w_oihw, kp, cout_pad):
    """(Cout, Cin, 3, 3) -> (kp, cout_pad) in im2col order, zero padded, bf16."""
    cout, cin = w_oihw.shape[0], w_oihw.shape[1]
    w = jnp.transpose(w_oihw, (2, 3, 1, 0)).reshape(9 * cin, cout)
    w = jnp.pad(w, ((0, kp - 9 * cin), (0, cout_pad - cout)))
    return w.astype(jnp.bfloat16)


def _im2col_3x3(x_nhwc, stride, k_pad):
    """x_nhwc: (N,H,W,C), 3x3 kernel, padding=1 -> (N, Ho*Wo, 9*C + k_pad).
    The K padding is folded into the concat (no second pad pass)."""
    n, h, w, c = x_nhwc.shape
    ho = (h + 2 - 3) // stride + 1
    wo = (w + 2 - 3) // stride + 1
    xp = jnp.pad(x_nhwc, ((0, 0), (1, 1), (1, 1), (0, 0)))
    cols = []
    for kh in range(3):
        for kw in range(3):
            patch = xp[:, kh:kh + (ho - 1) * stride + 1:stride,
                       kw:kw + (wo - 1) * stride + 1:stride, :]
            cols.append(patch)
    if k_pad:
        cols.append(jnp.zeros((n, ho, wo, k_pad), x_nhwc.dtype))
    x_col = jnp.concatenate(cols, axis=-1)
    return x_col.reshape(n, ho * wo, 9 * c + k_pad), ho, wo


def _fold_bn(stats, gamma, beta, m_real):
    """Fold per-image batch statistics into per-channel scale/shift (f32, 128 lanes).
    NOTE: padded channels carry exactly-zero conv values (zero-padded weights), so
    mean=var=0 there and the folded shift is 0 -> they stay zero downstream."""
    s = jnp.sum(stats[:, 0, :], axis=0)
    ss = jnp.sum(stats[:, 1, :], axis=0)
    mean = s / m_real
    # TODO(synk): E[x^2]-E[x]^2 can cancel for large |mean|; a Welford combine across
    # per-image stats would be more robust.
    var = jnp.maximum(ss / m_real - mean * mean, 0.0)
    c = gamma.shape[0]
    gamma_p = jnp.pad(gamma.astype(jnp.float32), (0, _LANES - c),
                      constant_values=1.0)
    beta_p = jnp.pad(beta.astype(jnp.float32), (0, _LANES - c))
    scale = gamma_p * jax.lax.rsqrt(var + _EPS)
    shift = beta_p - mean * scale
    return scale.reshape(1, _LANES), shift.reshape(1, _LANES)


# ---------------------------------------------------------------------------
# BasicBlock forward (in_planes -> planes, stride, option 'A')
# ---------------------------------------------------------------------------
def basic_block_forward(x_nchw, params, *, stride, in_planes, planes):
    assert planes <= _LANES
    n, cin, h, w = x_nchw.shape
    x_nhwc = jnp.transpose(x_nchw, (0, 2, 3, 1))

    # ---------------- conv1 (raw output on conv2's padded grid) ----------------
    if stride == 1:
        ho1, wo1 = h, w
        hp, wp = h + 2, w + 2
        cin_p = _round_up(cin, 16)
        xp = jnp.pad(x_nhwc.astype(jnp.bfloat16),
                     ((0, 0), (1, 1), (1, 1), (0, cin_p - cin)))
        xflat = xp.reshape(n, hp * wp, cin_p)
        w1 = _taps_from_oihw(params["conv1_w"], cin_p, _LANES)
        mask1 = _interior_mask(hp, wp)
        conv1_raw, stats1 = _conv9_input(xflat, w1, mask1, wp=wp)
        hp2, wp2 = hp, wp            # conv2's padded grid == conv1's compute grid
    else:
        kp = _round_up(9 * cin, 16)
        x_col, ho1, wo1 = _im2col_3x3(x_nhwc.astype(jnp.bfloat16), stride,
                                      kp - 9 * cin)
        w1 = _mat_from_oihw(params["conv1_w"], kp, _LANES)
        conv1_raw, stats1 = _conv_im2col(x_col, w1, ho=ho1, wo=wo1)
        hp2, wp2 = ho1 + 2, wo1 + 2

    m_valid1 = float(n * ho1 * wo1)
    scale1, shift1 = _fold_bn(stats1, params["bn1_gamma"], params["bn1_beta"],
                              m_valid1)

    # -------- conv2 (stride 1) with BN1 + ReLU fused into its input path --------
    w2 = _taps_from_oihw(params["conv2_w"], _LANES, _LANES)
    mask2 = _interior_mask(hp2, wp2)
    conv2_raw, stats2 = _conv9_bnrelu(conv1_raw, scale1, shift1, w2, mask2,
                                      wp=wp2)

    ho2, wo2 = ho1, wo1
    m_valid2 = float(n * ho2 * wo2)
    scale2, shift2 = _fold_bn(stats2, params["bn2_gamma"], params["bn2_beta"],
                              m_valid2)

    # ------------------------------ shortcut ------------------------------
    if stride != 1 or in_planes != planes:
        pad_c = planes // 4
        sc = x_nhwc[:, ::2, ::2, :]
        sc = jnp.pad(sc, ((0, 0), (0, 0), (0, 0), (pad_c, pad_c)))
    else:
        sc = x_nhwc
    res = sc.astype(jnp.bfloat16)

    # -------------------- BN2 apply + residual + ReLU --------------------
    out_nhwc = _bn_residual_relu(conv2_raw, scale2, shift2, res,
                                 ho=ho2, wo=wo2, cout=planes)
    return jnp.transpose(out_nhwc, (0, 3, 1, 2))


# ---------------------------------------------------------------------------
# Pure-JAX f32 reference (PyTorch training-mode BN semantics) for sanity checks.
# ---------------------------------------------------------------------------
def _lambda_shortcut(x_nchw, planes):
    sub = x_nchw[:, :, ::2, ::2]
    pad = planes // 4
    return jnp.pad(sub, ((0, 0), (pad, pad), (0, 0), (0, 0)))


def _reference_forward(x_nchw, params, *, stride, in_planes, planes):
    def conv(x, w, s):
        return jax.lax.conv_general_dilated(
            x, w, window_strides=(s, s), padding=((1, 1), (1, 1)),
            dimension_numbers=("NCHW", "OIHW", "NCHW"))

    def bn(x, gamma, beta):
        mean = jnp.mean(x, axis=(0, 2, 3), keepdims=True)
        var = jnp.mean(jnp.square(x - mean), axis=(0, 2, 3), keepdims=True)
        g = gamma.reshape(1, -1, 1, 1)
        b = beta.reshape(1, -1, 1, 1)
        return (x - mean) * jax.lax.rsqrt(var + _EPS) * g + b

    out = jax.nn.relu(bn(conv(x_nchw, params["conv1_w"], stride),
                         params["bn1_gamma"], params["bn1_beta"]))
    out = bn(conv(out, params["conv2_w"], 1),
             params["bn2_gamma"], params["bn2_beta"])
    if stride != 1 or in_planes != planes:
        out = out + _lambda_shortcut(x_nchw, planes)
    else:
        out = out + x_nchw
    return jax.nn.relu(out)


# ---------------------------------------------------------------------------
# Self-test
# ---------------------------------------------------------------------------
def _make_params(key, in_planes, planes):
    k1, k2 = jax.random.split(key)
    return {
        "conv1_w": 0.1 * jax.random.normal(k1, (planes, in_planes, 3, 3),
                                           jnp.float32),
        "conv2_w": 0.1 * jax.random.normal(k2, (planes, planes, 3, 3),
                                           jnp.float32),
        "bn1_gamma": jnp.ones((planes,), jnp.float32),
        "bn1_beta": jnp.zeros((planes,), jnp.float32),
        "bn2_gamma": jnp.ones((planes,), jnp.float32),
        "bn2_beta": jnp.zeros((planes,), jnp.float32),
    }


def _run_case(key, n, in_planes, planes, h, w, stride):
    kp, kx = jax.random.split(key)
    params = _make_params(kp, in_planes, planes)
    x = jax.random.normal(kx, (n, in_planes, h, w), jnp.float32)

    fwd = jax.jit(functools.partial(basic_block_forward, stride=stride,
                                    in_planes=in_planes, planes=planes))
    out = jax.block_until_ready(fwd(x, params))

    ref = jax.block_until_ready(
        _reference_forward(x, params, stride=stride,
                           in_planes=in_planes, planes=planes))
    ho = (h + 2 - 3) // stride + 1
    wo = (w + 2 - 3) // stride + 1
    assert out.shape == (n, planes, ho, wo), out.shape
    # Tolerance loosened to 5e-2: conv matmuls run with bf16 inputs (f32 accumulation)
    # and the conv intermediates / residual are stored in bf16.
    max_err = float(jnp.max(jnp.abs(out - ref)))
    assert max_err < 5e-2, max_err


if __name__ == "__main__":
    key = jax.random.PRNGKey(0)
    k_a, k_b = jax.random.split(key)

    # Option-'A' downsampling block: batch=2, in_planes=4, planes=8, 16x16, stride=2
    # (exercises the im2col conv1 kernel, the fused-BN conv2 kernel, the final kernel).
    _run_case(k_a, n=2, in_planes=4, planes=8, h=16, w=16, stride=2)

    # Identity-shortcut block: batch=2, in_planes=planes=8, 16x16, stride=1
    # (exercises the in-kernel-im2col conv1 kernel and the identity residual).
    _run_case(k_b, n=2, in_planes=8, planes=8, h=16, w=16, stride=1)

    print("KERNEL_OK")
</pallas_src>

<mosaic_0001>
module attributes {stable_mosaic.version = 11 : i64} {
  func.func @_conv_im2col_kernel(%arg0: i32, %arg1: memref<1x64x48xbf16, #tpu.memory_space<vmem>>, %arg2: memref<48x128xbf16, #tpu.memory_space<vmem>>, %arg3: memref<1x100x128xbf16, #tpu.memory_space<vmem>>, %arg4: memref<1x2x128xf32, #tpu.memory_space<vmem>>) attributes {dimension_semantics = [#tpu.dimension_semantics<parallel>], iteration_bounds = array<i64: 2>, scalar_prefetch = 0 : i64, scratch_operands = 0 : i64, tpu.core_type = #tpu.core_type<tc>, window_params = [{transform_indices = @transform_0, window_bounds = array<i64: 1, 64, 48>}, {pipeline_mode = #tpu.pipeline_mode<synchronous>, transform_indices = @transform_1, window_bounds = array<i64: 48, 128>}, {transform_indices = @transform_2, window_bounds = array<i64: 1, 100, 128>}, {transform_indices = @transform_3, window_bounds = array<i64: 1, 2, 128>}]} {
    %c0 = arith.constant 0 : index
    %c0_0 = arith.constant 0 : index
    %c0_1 = arith.constant 0 : index
    %0 = vector.load %arg1[%c0, %c0_0, %c0_1] : memref<1x64x48xbf16, #tpu.memory_space<vmem>>, vector<1x64x48xbf16>
    %1 = vector.shape_cast %0 : vector<1x64x48xbf16> to vector<64x48xbf16>
    %c0_2 = arith.constant 0 : index
    %c0_3 = arith.constant 0 : index
    %2 = vector.load %arg2[%c0_2, %c0_3] : memref<48x128xbf16, #tpu.memory_space<vmem>>, vector<48x128xbf16>
    %cst = arith.constant dense<0.000000e+00> : vector<64x128xf32>
    %3 = tpu.matmul %1, %2, %cst {dimension_numbers = #tpu.dot_dimension_numbers<[1], [0], [0], [1], [0, 0, 1, 1], [], []>} : vector<64x48xbf16>, vector<48x128xbf16>, vector<64x128xf32> -> vector<64x128xf32>
    %cst_4 = arith.constant 0.000000e+00 : bf16
    %4 = vector.broadcast %cst_4 : bf16 to vector<1x100x128xbf16>
    %c0_5 = arith.constant 0 : index
    %c0_6 = arith.constant 0 : index
    %c0_7 = arith.constant 0 : index
    %5 = vector.load %arg3[%c0_5, %c0_6, %c0_7] : memref<1x100x128xbf16, #tpu.memory_space<vmem>>, vector<1x100x128xbf16>
    tpu.vector_store %arg3[%c0_5, %c0_6, %c0_7], %4 {strides = array<i32>} : memref<1x100x128xbf16, #tpu.memory_space<vmem>>, vector<1x100x128xbf16>,
    %6 = vector.extract_strided_slice %3 {offsets = [0, 0], sizes = [8, 128], strides = [1, 1]} : vector<64x128xf32> to vector<8x128xf32>
    %7 = arith.truncf %6 : vector<8x128xf32> to vector<8x128xbf16>
    %c0_8 = arith.constant 0 : index
    %c11 = arith.constant 11 : index
    %c0_9 = arith.constant 0 : index
    %8 = vector.load %arg3[%c0_8, %c11, %c0_9] : memref<1x100x128xbf16, #tpu.memory_space<vmem>>, vector<1x8x128xbf16>
    %9 = vector.shape_cast %8 : vector<1x8x128xbf16> to vector<8x128xbf16>
    %10 = vector.shape_cast %7 : vector<8x128xbf16> to vector<1x8x128xbf16>
    tpu.vector_store %arg3[%c0_8, %c11, %c0_9], %10 {strides = array<i32>} : memref<1x100x128xbf16, #tpu.memory_space<vmem>>, vector<1x8x128xbf16>,
    %11 = vector.extract_strided_slice %3 {offsets = [8, 0], sizes = [8, 128], strides = [1, 1]} : vector<64x128xf32> to vector<8x128xf32>
    %12 = arith.truncf %11 : vector<8x128xf32> to vector<8x128xbf16>
    %c0_10 = arith.constant 0 : index
    %c21 = arith.constant 21 : index
    %c0_11 = arith.constant 0 : index
    %13 = vector.load %arg3[%c0_10, %c21, %c0_11] : memref<1x100x128xbf16, #tpu.memory_space<vmem>>, vector<1x8x128xbf16>
    %14 = vector.shape_cast %13 : vector<1x8x128xbf16> to vector<8x128xbf16>
    %15 = vector.shape_cast %12 : vector<8x128xbf16> to vector<1x8x128xbf16>
    tpu.vector_store %arg3[%c0_10, %c21, %c0_11], %15 {strides = array<i32>} : memref<1x100x128xbf16, #tpu.memory_space<vmem>>, vector<1x8x128xbf16>,
    %16 = vector.extract_strided_slice %3 {offsets = [16, 0], sizes = [8, 128], strides = [1, 1]} : vector<64x128xf32> to vector<8x128xf32>
    %17 = arith.truncf %16 : vector<8x128xf32> to vector<8x128xbf16>
    %c0_12 = arith.constant 0 : index
    %c31 = arith.constant 31 : index
    %c0_13 = arith.constant 0 : index
    %18 = vector.load %arg3[%c0_12, %c31, %c0_13] : memref<1x100x128xbf16, #tpu.memory_space<vmem>>, vector<1x8x128xbf16>
    %19 = vector.shape_cast %18 : vector<1x8x128xbf16> to vector<8x128xbf16>
    %20 = vector.shape_cast %17 : vector<8x128xbf16> to vector<1x8x128xbf16>
    tpu.vector_store %arg3[%c0_12, %c31, %c0_13], %20 {strides = array<i32>} : memref<1x100x128xbf16, #tpu.memory_space<vmem>>, vector<1x8x128xbf16>,
    %21 = vector.extract_strided_slice %3 {offsets = [24, 0], sizes = [8, 128], strides = [1, 1]} : vector<64x128xf32> to vector<8x128xf32>
    %22 = arith.truncf %21 : vector<8x128xf32> to vector<8x128xbf16>
    %c0_14 = arith.constant 0 : index
    %c41 = arith.constant 41 : index
    %c0_15 = arith.constant 0 : index
    %23 = vector.load %arg3[%c0_14, %c41, %c0_15] : memref<1x100x128xbf16, #tpu.memory_space<vmem>>, vector<1x8x128xbf16>
    %24 = vector.shape_cast %23 : vector<1x8x128xbf16> to vector<8x128xbf16>
    %25 = vector.shape_cast %22 : vector<8x128xbf16> to vector<1x8x128xbf16>
    tpu.vector_store %arg3[%c0_14, %c41, %c0_15], %25 {strides = array<i32>} : memref<1x100x128xbf16, #tpu.memory_space<vmem>>, vector<1x8x128xbf16>,
    %26 = vector.extract_strided_slice %3 {offsets = [32, 0], sizes = [8, 128], strides = [1, 1]} : vector<64x128xf32> to vector<8x128xf32>
    %27 = arith.truncf %26 : vector<8x128xf32> to vector<8x128xbf16>
    %c0_16 = arith.constant 0 : index
    %c51 = arith.constant 51 : index
    %c0_17 = arith.constant 0 : index
    %28 = vector.load %arg3[%c0_16, %c51, %c0_17] : memref<1x100x128xbf16, #tpu.memory_space<vmem>>, vector<1x8x128xbf16>
    %29 = vector.shape_cast %28 : vector<1x8x128xbf16> to vector<8x128xbf16>
    %30 = vector.shape_cast %27 : vector<8x128xbf16> to vector<1x8x128xbf16>
    tpu.vector_store %arg3[%c0_16, %c51, %c0_17], %30 {strides = array<i32>} : memref<1x100x128xbf16, #tpu.memory_space<vmem>>, vector<1x8x128xbf16>,
    %31 = vector.extract_strided_slice %3 {offsets = [40, 0], sizes = [8, 128], strides = [1, 1]} : vector<64x128xf32> to vector<8x128xf32>
    %32 = arith.truncf %31 : vector<8x128xf32> to vector<8x128xbf16>
    %c0_18 = arith.constant 0 : index
    %c61 = arith.constant 61 : index
    %c0_19 = arith.constant 0 : index
    %33 = vector.load %arg3[%c0_18, %c61, %c0_19] : memref<1x100x128xbf16, #tpu.memory_space<vmem>>, vector<1x8x128xbf16>
    %34 = vector.shape_cast %33 : vector<1x8x128xbf16> to vector<8x128xbf16>
    %35 = vector.shape_cast %32 : vector<8x128xbf16> to vector<1x8x128xbf16>
    tpu.vector_store %arg3[%c0_18, %c61, %c0_19], %35 {strides = array<i32>} : memref<1x100x128xbf16, #tpu.memory_space<vmem>>, vector<1x8x128xbf16>,
    %36 = vector.extract_strided_slice %3 {offsets = [48, 0], sizes = [8, 128], strides = [1, 1]} : vector<64x128xf32> to vector<8x128xf32>
    %37 = arith.truncf %36 : vector<8x128xf32> to vector<8x128xbf16>
    %c0_20 = arith.constant 0 : index
    %c71 = arith.constant 71 : index
    %c0_21 = arith.constant 0 : index
    %38 = vector.load %arg3[%c0_20, %c71, %c0_21] : memref<1x100x128xbf16, #tpu.memory_space<vmem>>, vector<1x8x128xbf16>
    %39 = vector.shape_cast %38 : vector<1x8x128xbf16> to vector<8x128xbf16>
    %40 = vector.shape_cast %37 : vector<8x128xbf16> to vector<1x8x128xbf16>
    tpu.vector_store %arg3[%c0_20, %c71, %c0_21], %40 {strides = array<i32>} : memref<1x100x128xbf16, #tpu.memory_space<vmem>>, vector<1x8x128xbf16>,
    %41 = vector.extract_strided_slice %3 {offsets = [56, 0], sizes = [8, 128], strides = [1, 1]} : vector<64x128xf32> to vector<8x128xf32>
    %42 = arith.truncf %41 : vector<8x128xf32> to vector<8x128xbf16>
    %c0_22 = arith.constant 0 : index
    %c81 = arith.constant 81 : index
    %c0_23 = arith.constant 0 : index
    %43 = vector.load %arg3[%c0_22, %c81, %c0_23] : memref<1x100x128xbf16, #tpu.memory_space<vmem>>, vector<1x8x128xbf16>
    %44 = vector.shape_cast %43 : vector<1x8x128xbf16> to vector<8x128xbf16>
    %45 = vector.shape_cast %42 : vector<8x128xbf16> to vector<1x8x128xbf16>
    tpu.vector_store %arg3[%c0_22, %c81, %c0_23], %45 {strides = array<i32>} : memref<1x100x128xbf16, #tpu.memory_space<vmem>>, vector<1x8x128xbf16>,
    %cst_24 = arith.constant dense<0.000000e+00> : vector<128xf32>
    %46 = vector.multi_reduction <add>, %3, %cst_24 [0] : vector<64x128xf32> to vector<128xf32>
    %47 = vector.shape_cast %46 : vector<128xf32> to vector<1x128xf32>
    %48 = arith.mulf %3, %3 : vector<64x128xf32>
    %cst_25 = arith.constant dense<0.000000e+00> : vector<128xf32>
    %49 = vector.multi_reduction <add>, %48, %cst_25 [0] : vector<64x128xf32> to vector<128xf32>
    %50 = vector.shape_cast %49 : vector<128xf32> to vector<1x128xf32>
    %51 = tpu.concatenate %47, %50 in 0 : vector<1x128xf32>, vector<1x128xf32> -> vector<2x128xf32>
    %c0_26 = arith.constant 0 : index
    %c0_27 = arith.constant 0 : index
    %c0_28 = arith.constant 0 : index
    %52 = vector.load %arg4[%c0_26, %c0_27, %c0_28] : memref<1x2x128xf32, #tpu.memory_space<vmem>>, vector<1x2x128xf32>
    %53 = vector.shape_cast %52 : vector<1x2x128xf32> to vector<2x128xf32>
    %54 = vector.shape_cast %51 : vector<2x128xf32> to vector<1x2x128xf32>
    tpu.vector_store %arg4[%c0_26, %c0_27, %c0_28], %54 {strides = array<i32>} : memref<1x2x128xf32, #tpu.memory_space<vmem>>, vector<1x2x128xf32>,
    return
  }
  func.func @transform_0(%arg0: i32) -> (i32, i32, i32) {
    %c0_i32 = arith.constant 0 : i32
    %c0_i32_0 = arith.constant 0 : i32
    %c0_i32_1 = arith.constant 0 : i32
    return %arg0, %c0_i32, %c0_i32_0 : i32, i32, i32
  }
  func.func @transform_1(%arg0: i32) -> (i32, i32) {
    %c0_i32 = arith.constant 0 : i32
    %c0_i32_0 = arith.constant 0 : i32
    %c0_i32_1 = arith.constant 0 : i32
    return %c0_i32, %c0_i32_0 : i32, i32
  }
  func.func @transform_2(%arg0: i32) -> (i32, i32, i32) {
    %c0_i32 = arith.constant 0 : i32
    %c0_i32_0 = arith.constant 0 : i32
    %c0_i32_1 = arith.constant 0 : i32
    return %arg0, %c0_i32, %c0_i32_0 : i32, i32, i32
  }
  func.func @transform_3(%arg0: i32) -> (i32, i32, i32) {
    %c0_i32 = arith.constant 0 : i32
    %c0_i32_0 = arith.constant 0 : i32
    %c0_i32_1 = arith.constant 0 : i32
    return %arg0, %c0_i32, %c0_i32_0 : i32, i32, i32
  }
}

module attributes {stable_mosaic.version = 11 : i64} {
  func.func @_conv9_bnrelu_kernel(%arg0: i32, %arg1: memref<1x100x128xbf16, #tpu.memory_space<vmem>>, %arg2: memref<1x128xf32, #tpu.memory_space<vmem>>, %arg3: memref<1x128xf32, #tpu.memory_space<vmem>>, %arg4: memref<9x128x128xbf16, #tpu.memory_space<vmem>>, %arg5: memref<100x1xf32, #tpu.memory_space<vmem>>, %arg6: memref<1x100x128xbf16, #tpu.memory_space<vmem>>, %arg7: memref<1x2x128xf32, #tpu.memory_space<vmem>>, %arg8: memref<122x128xbf16, #tpu.memory_space<vmem>>) attributes {dimension_semantics = [#tpu.dimension_semantics<parallel>], iteration_bounds = array<i64: 2>, scalar_prefetch = 0 : i64, scratch_operands = 1 : i64, tpu.core_type = #tpu.core_type<tc>, window_params = [{transform_indices = @transform_0, window_bounds = array<i64: 1, 100, 128>}, {pipeline_mode = #tpu.pipeline_mode<synchronous>, transform_indices = @transform_1, window_bounds = array<i64: 1, 128>}, {pipeline_mode = #tpu.pipeline_mode<synchronous>, transform_indices = @transform_2, window_bounds = array<i64: 1, 128>}, {pipeline_mode = #tpu.pipeline_mode<synchronous>, transform_indices = @transform_3, window_bounds = array<i64: 9, 128, 128>}, {pipeline_mode = #tpu.pipeline_mode<synchronous>, transform_indices = @transform_4, window_bounds = array<i64: 100, 1>}, {transform_indices = @transform_5, window_bounds = array<i64: 1, 100, 128>}, {transform_indices = @transform_6, window_bounds = array<i64: 1, 2, 128>}]} {
    %cst = arith.constant 0.000000e+00 : bf16
    %0 = vector.broadcast %cst : bf16 to vector<11x128xbf16>
    %c0 = arith.constant 0 : index
    %c0_0 = arith.constant 0 : index
    %1 = vector.load %arg8[%c0, %c0_0] : memref<122x128xbf16, #tpu.memory_space<vmem>>, vector<11x128xbf16>
    tpu.vector_store %arg8[%c0, %c0_0], %0 {strides = array<i32>} : memref<122x128xbf16, #tpu.memory_space<vmem>>, vector<11x128xbf16>,
    %c111 = arith.constant 111 : index
    %c0_1 = arith.constant 0 : index
    %2 = vector.load %arg8[%c111, %c0_1] : memref<122x128xbf16, #tpu.memory_space<vmem>>, vector<11x128xbf16>
    tpu.vector_store %arg8[%c111, %c0_1], %0 {strides = array<i32>} : memref<122x128xbf16, #tpu.memory_space<vmem>>, vector<11x128xbf16>,
    %c0_2 = arith.constant 0 : index
    %c0_3 = arith.constant 0 : index
    %c0_4 = arith.constant 0 : index
    %3 = vector.load %arg1[%c0_2, %c0_3, %c0_4] : memref<1x100x128xbf16, #tpu.memory_space<vmem>>, vector<1x100x128xbf16>
    %4 = vector.shape_cast %3 : vector<1x100x128xbf16> to vector<100x128xbf16>
    %5 = arith.extf %4 : vector<100x128xbf16> to vector<100x128xf32>
    %c0_5 = arith.constant 0 : index
    %c0_6 = arith.constant 0 : index
    %6 = vector.load %arg5[%c0_5, %c0_6] : memref<100x1xf32, #tpu.memory_space<vmem>>, vector<100x1xf32>
    %c0_7 = arith.constant 0 : index
    %c0_8 = arith.constant 0 : index
    %7 = vector.load %arg2[%c0_7, %c0_8] : memref<1x128xf32, #tpu.memory_space<vmem>>, vector<1x128xf32>
    %8 = vector.broadcast %7 : vector<1x128xf32> to vector<100x128xf32>
    %9 = arith.mulf %5, %8 : vector<100x128xf32>
    %c0_9 = arith.constant 0 : index
    %c0_10 = arith.constant 0 : index
    %10 = vector.load %arg3[%c0_9, %c0_10] : memref<1x128xf32, #tpu.memory_space<vmem>>, vector<1x128xf32>
    %11 = vector.broadcast %10 : vector<1x128xf32> to vector<100x128xf32>
    %12 = arith.addf %9, %11 : vector<100x128xf32>
    %cst_11 = arith.constant 0.000000e+00 : f32
    %13 = vector.broadcast %cst_11 : f32 to vector<100x128xf32>
    %14 = arith.maximumf %12, %13 : vector<100x128xf32>
    %15 = vector.broadcast %6 : vector<100x1xf32> to vector<100x128xf32>
    %16 = arith.mulf %14, %15 : vector<100x128xf32>
    %17 = arith.truncf %16 : vector<100x128xf32> to vector<100x128xbf16>
    %c11 = arith.constant 11 : index
    %c0_12 = arith.constant 0 : index
    %18 = vector.load %arg8[%c11, %c0_12] : memref<122x128xbf16, #tpu.memory_space<vmem>>, vector<100x128xbf16>
    tpu.vector_store %arg8[%c11, %c0_12], %17 {strides = array<i32>} : memref<122x128xbf16, #tpu.memory_space<vmem>>, vector<100x128xbf16>,
    %c0_13 = arith.constant 0 : index
    %c0_14 = arith.constant 0 : index
    %19 = vector.load %arg8[%c0_13, %c0_14] : memref<122x128xbf16, #tpu.memory_space<vmem>>, vector<100x128xbf16>
    %c0_15 = arith.constant 0 : index
    %c0_16 = arith.constant 0 : index
    %c0_17 = arith.constant 0 : index
    %20 = vector.load %arg4[%c0_15, %c0_16, %c0_17] : memref<9x128x128xbf16, #tpu.memory_space<vmem>>, vector<1x128x128xbf16>
    %21 = vector.shape_cast %20 : vector<1x128x128xbf16> to vector<128x128xbf16>
    %cst_18 = arith.constant dense<0.000000e+00> : vector<100x128xf32>
    %22 = tpu.matmul %19, %21, %cst_18 {dimension_numbers = #tpu.dot_dimension_numbers<[1], [0], [0], [1], [0, 0, 1, 1], [], []>} : vector<100x128xbf16>, vector<128x128xbf16>, vector<100x128xf32> -> vector<100x128xf32>
    %c1 = arith.constant 1 : index
    %c0_19 = arith.constant 0 : index
    %23 = vector.load %arg8[%c1, %c0_19] : memref<122x128xbf16, #tpu.memory_space<vmem>>, vector<100x128xbf16>
    %c1_20 = arith.constant 1 : index
    %c0_21 = arith.constant 0 : index
    %c0_22 = arith.constant 0 : index
    %24 = vector.load %arg4[%c1_20, %c0_21, %c0_22] : memref<9x128x128xbf16, #tpu.memory_space<vmem>>, vector<1x128x128xbf16>
    %25 = vector.shape_cast %24 : vector<1x128x128xbf16> to vector<128x128xbf16>
    %cst_23 = arith.constant dense<0.000000e+00> : vector<100x128xf32>
    %26 = tpu.matmul %23, %25, %cst_23 {dimension_numbers = #tpu.dot_dimension_numbers<[1], [0], [0], [1], [0, 0, 1, 1], [], []>} : vector<100x128xbf16>, vector<128x128xbf16>, vector<100x128xf32> -> vector<100x128xf32>
    %27 = arith.addf %22, %26 : vector<100x128xf32>
    %c2 = arith.constant 2 : index
    %c0_24 = arith.constant 0 : index
    %28 = vector.load %arg8[%c2, %c0_24] : memref<122x128xbf16, #tpu.memory_space<vmem>>, vector<100x128xbf16>
    %c2_25 = arith.constant 2 : index
    %c0_26 = arith.constant 0 : index
    %c0_27 = arith.constant 0 : index
    %29 = vector.load %arg4[%c2_25, %c0_26, %c0_27] : memref<9x128x128xbf16, #tpu.memory_space<vmem>>, vector<1x128x128xbf16>
    %30 = vector.shape_cast %29 : vector<1x128x128xbf16> to vector<128x128xbf16>
    %cst_28 = arith.constant dense<0.000000e+00> : vector<100x128xf32>
    %31 = tpu.matmul %28, %30, %cst_28 {dimension_numbers = #tpu.dot_dimension_numbers<[1], [0], [0], [1], [0, 0, 1, 1], [], []>} : vector<100x128xbf16>, vector<128x128xbf16>, vector<100x128xf32> -> vector<100x128xf32>
    %32 = arith.addf %27, %31 : vector<100x128xf32>
    %c10 = arith.constant 10 : index
    %c0_29 = arith.constant 0 : index
    %33 = vector.load %arg8[%c10, %c0_29] : memref<122x128xbf16, #tpu.memory_space<vmem>>, vector<100x128xbf16>
    %c3 = arith.constant 3 : index
    %c0_30 = arith.constant 0 : index
    %c0_31 = arith.constant 0 : index
    %34 = vector.load %arg4[%c3, %c0_30, %c0_31] : memref<9x128x128xbf16, #tpu.memory_space<vmem>>, vector<1x128x128xbf16>
    %35 = vector.shape_cast %34 : vector<1x128x128xbf16> to vector<128x128xbf16>
    %cst_32 = arith.constant dense<0.000000e+00> : vector<100x128xf32>
    %36 = tpu.matmul %33, %35, %cst_32 {dimension_numbers = #tpu.dot_dimension_numbers<[1], [0], [0], [1], [0, 0, 1, 1], [], []>} : vector<100x128xbf16>, vector<128x128xbf16>, vector<100x128xf32> -> vector<100x128xf32>
    %37 = arith.addf %32, %36 : vector<100x128xf32>
    %c11_33 = arith.constant 11 : index
    %c0_34 = arith.constant 0 : index
    %38 = vector.load %arg8[%c11_33, %c0_34] : memref<122x128xbf16, #tpu.memory_space<vmem>>, vector<100x128xbf16>
    %c4 = arith.constant 4 : index
    %c0_35 = arith.constant 0 : index
    %c0_36 = arith.constant 0 : index
    %39 = vector.load %arg4[%c4, %c0_35, %c0_36] : memref<9x128x128xbf16, #tpu.memory_space<vmem>>, vector<1x128x128xbf16>
    %40 = vector.shape_cast %39 : vector<1x128x128xbf16> to vector<128x128xbf16>
    %cst_37 = arith.constant dense<0.000000e+00> : vector<100x128xf32>
    %41 = tpu.matmul %38, %40, %cst_37 {dimension_numbers = #tpu.dot_dimension_numbers<[1], [0], [0], [1], [0, 0, 1, 1], [], []>} : vector<100x128xbf16>, vector<128x128xbf16>, vector<100x128xf32> -> vector<100x128xf32>
    %42 = arith.addf %37, %41 : vector<100x128xf32>
    %c12 = arith.constant 12 : index
    %c0_38 = arith.constant 0 : index
    %43 = vector.load %arg8[%c12, %c0_38] : memref<122x128xbf16, #tpu.memory_space<vmem>>, vector<100x128xbf16>
    %c5 = arith.constant 5 : index
    %c0_39 = arith.constant 0 : index
    %c0_40 = arith.constant 0 : index
    %44 = vector.load %arg4[%c5, %c0_39, %c0_40] : memref<9x128x128xbf16, #tpu.memory_space<vmem>>, vector<1x128x128xbf16>
    %45 = vector.shape_cast %44 : vector<1x128x128xbf16> to vector<128x128xbf16>
    %cst_41 = arith.constant dense<0.000000e+00> : vector<100x128xf32>
    %46 = tpu.matmul %43, %45, %cst_41 {dimension_numbers = #tpu.dot_dimension_numbers<[1], [0], [0], [1], [0, 0, 1, 1], [], []>} : vector<100x128xbf16>, vector<128x128xbf16>, vector<100x128xf32> -> vector<100x128xf32>
    %47 = arith.addf %42, %46 : vector<100x128xf32>
    %c20 = arith.constant 20 : index
    %c0_42 = arith.constant 0 : index
    %48 = vector.load %arg8[%c20, %c0_42] : memref<122x128xbf16, #tpu.memory_space<vmem>>, vector<100x128xbf16>
    %c6 = arith.constant 6 : index
    %c0_43 = arith.constant 0 : index
    %c0_44 = arith.constant 0 : index
    %49 = vector.load %arg4[%c6, %c0_43, %c0_44] : memref<9x128x128xbf16, #tpu.memory_space<vmem>>, vector<1x128x128xbf16>
    %50 = vector.shape_cast %49 : vector<1x128x128xbf16> to vector<128x128xbf16>
    %cst_45 = arith.constant dense<0.000000e+00> : vector<100x128xf32>
    %51 = tpu.matmul %48, %50, %cst_45 {dimension_numbers = #tpu.dot_dimension_numbers<[1], [0], [0], [1], [0, 0, 1, 1], [], []>} : vector<100x128xbf16>, vector<128x128xbf16>, vector<100x128xf32> -> vector<100x128xf32>
    %52 = arith.addf %47, %51 : vector<100x128xf32>
    %c21 = arith.constant 21 : index
    %c0_46 = arith.constant 0 : index
    %53 = vector.load %arg8[%c21, %c0_46] : memref<122x128xbf16, #tpu.memory_space<vmem>>, vector<100x128xbf16>
    %c7 = arith.constant 7 : index
    %c0_47 = arith.constant 0 : index
    %c0_48 = arith.constant 0 : index
    %54 = vector.load %arg4[%c7, %c0_47, %c0_48] : memref<9x128x128xbf16, #tpu.memory_space<vmem>>, vector<1x128x128xbf16>
    %55 = vector.shape_cast %54 : vector<1x128x128xbf16> to vector<128x128xbf16>
    %cst_49 = arith.constant dense<0.000000e+00> : vector<100x128xf32>
    %56 = tpu.matmul %53, %55, %cst_49 {dimension_numbers = #tpu.dot_dimension_numbers<[1], [0], [0], [1], [0, 0, 1, 1], [], []>} : vector<100x128xbf16>, vector<128x128xbf16>, vector<100x128xf32> -> vector<100x128xf32>
    %57 = arith.addf %52, %56 : vector<100x128xf32>
    %c22 = arith.constant 22 : index
    %c0_50 = arith.constant 0 : index
    %58 = vector.load %arg8[%c22, %c0_50] : memref<122x128xbf16, #tpu.memory_space<vmem>>, vector<100x128xbf16>
    %c8 = arith.constant 8 : index
    %c0_51 = arith.constant 0 : index
    %c0_52 = arith.constant 0 : index
    %59 = vector.load %arg4[%c8, %c0_51, %c0_52] : memref<9x128x128xbf16, #tpu.memory_space<vmem>>, vector<1x128x128xbf16>
    %60 = vector.shape_cast %59 : vector<1x128x128xbf16> to vector<128x128xbf16>
    %cst_53 = arith.constant dense<0.000000e+00> : vector<100x128xf32>
    %61 = tpu.matmul %58, %60, %cst_53 {dimension_numbers = #tpu.dot_dimension_numbers<[1], [0], [0], [1], [0, 0, 1, 1], [], []>} : vector<100x128xbf16>, vector<128x128xbf16>, vector<100x128xf32> -> vector<100x128xf32>
    %62 = arith.addf %57, %61 : vector<100x128xf32>
    %63 = arith.truncf %62 : vector<100x128xf32> to vector<100x128xbf16>
    %c0_54 = arith.constant 0 : index
    %c0_55 = arith.constant 0 : index
    %c0_56 = arith.constant 0 : index
    %64 = vector.load %arg6[%c0_54, %c0_55, %c0_56] : memref<1x100x128xbf16, #tpu.memory_space<vmem>>, vector<1x100x128xbf16>
    %65 = vector.shape_cast %64 : vector<1x100x128xbf16> to vector<100x128xbf16>
    %66 = vector.shape_cast %63 : vector<100x128xbf16> to vector<1x100x128xbf16>
    tpu.vector_store %arg6[%c0_54, %c0_55, %c0_56], %66 {strides = array<i32>} : memref<1x100x128xbf16, #tpu.memory_space<vmem>>, vector<1x100x128xbf16>,
    %67 = vector.broadcast %6 : vector<100x1xf32> to vector<100x128xf32>
    %68 = arith.mulf %62, %67 : vector<100x128xf32>
    %cst_57 = arith.constant dense<0.000000e+00> : vector<128xf32>
    %69 = vector.multi_reduction <add>, %68, %cst_57 [0] : vector<100x128xf32> to vector<128xf32>
    %70 = vector.shape_cast %69 : vector<128xf32> to vector<1x128xf32>
    %71 = arith.mulf %68, %62 : vector<100x128xf32>
    %cst_58 = arith.constant dense<0.000000e+00> : vector<128xf32>
    %72 = vector.multi_reduction <add>, %71, %cst_58 [0] : vector<100x128xf32> to vector<128xf32>
    %73 = vector.shape_cast %72 : vector<128xf32> to vector<1x128xf32>
    %74 = tpu.concatenate %70, %73 in 0 : vector<1x128xf32>, vector<1x128xf32> -> vector<2x128xf32>
    %c0_59 = arith.constant 0 : index
    %c0_60 = arith.constant 0 : index
    %c0_61 = arith.constant 0 : index
    %75 = vector.load %arg7[%c0_59, %c0_60, %c0_61] : memref<1x2x128xf32, #tpu.memory_space<vmem>>, vector<1x2x128xf32>
    %76 = vector.shape_cast %75 : vector<1x2x128xf32> to vector<2x128xf32>
    %77 = vector.shape_cast %74 : vector<2x128xf32> to vector<1x2x128xf32>
    tpu.vector_store %arg7[%c0_59, %c0_60, %c0_61], %77 {strides = array<i32>} : memref<1x2x128xf32, #tpu.memory_space<vmem>>, vector<1x2x128xf32>,
    return
  }
  func.func @transform_0(%arg0: i32) -> (i32, i32, i32) {
    %c0_i32 = arith.constant 0 : i32
    %c0_i32_0 = arith.constant 0 : i32
    %c0_i32_1 = arith.constant 0 : i32
    return %arg0, %c0_i32, %c0_i32_0 : i32, i32, i32
  }
  func.func @transform_1(%arg0: i32) -> (i32, i32) {
    %c0_i32 = arith.constant 0 : i32
    %c0_i32_0 = arith.constant 0 : i32
    %c0_i32_1 = arith.constant 0 : i32
    return %c0_i32, %c0_i32_0 : i32, i32
  }
  func.func @transform_2(%arg0: i32) -> (i32, i32) {
    %c0_i32 = arith.constant 0 : i32
    %c0_i32_0 = arith.constant 0 : i32
    %c0_i32_1 = arith.constant 0 : i32
    return %c0_i32, %c0_i32_0 : i32, i32
  }
  func.func @transform_3(%arg0: i32) -> (i32, i32, i32) {
    %c0_i32 = arith.constant 0 : i32
    %c0_i32_0 = arith.constant 0 : i32
    %c0_i32_1 = arith.constant 0 : i32
    %c0_i32_2 = arith.constant 0 : i32
    return %c0_i32, %c0_i32_0, %c0_i32_1 : i32, i32, i32
  }
  func.func @transform_4(%arg0: i32) -> (i32, i32) {
    %c0_i32 = arith.constant 0 : i32
    %c0_i32_0 = arith.constant 0 : i32
    %c0_i32_1 = arith.constant 0 : i32
    return %c0_i32, %c0_i32_0 : i32, i32
  }
  func.func @transform_5(%arg0: i32) -> (i32, i32, i32) {
    %c0_i32 = arith.constant 0 : i32
    %c0_i32_0 = arith.constant 0 : i32
    %c0_i32_1 = arith.constant 0 : i32
    return %arg0, %c0_i32, %c0_i32_0 : i32, i32, i32
  }
  func.func @transform_6(%arg0: i32) -> (i32, i32, i32) {
    %c0_i32 = arith.constant 0 : i32
    %c0_i32_0 = arith.constant 0 : i32
    %c0_i32_1 = arith.constant 0 : i32
    return %arg0, %c0_i32, %c0_i32_0 : i32, i32, i32
  }
}

module attributes {stable_mosaic.version = 11 : i64} {
  func.func @_bn_res_relu_kernel(%arg0: i32, %arg1: memref<1x100x128xbf16, #tpu.memory_space<vmem>>, %arg2: memref<1x128xf32, #tpu.memory_space<vmem>>, %arg3: memref<1x128xf32, #tpu.memory_space<vmem>>, %arg4: memref<1x8x8x8xbf16, #tpu.memory_space<vmem>>, %arg5: memref<1x8x8x8xf32, #tpu.memory_space<vmem>>) attributes {dimension_semantics = [#tpu.dimension_semantics<parallel>], iteration_bounds = array<i64: 2>, scalar_prefetch = 0 : i64, scratch_operands = 0 : i64, tpu.core_type = #tpu.core_type<tc>, window_params = [{transform_indices = @transform_0, window_bounds = array<i64: 1, 100, 128>}, {pipeline_mode = #tpu.pipeline_mode<synchronous>, transform_indices = @transform_1, window_bounds = array<i64: 1, 128>}, {pipeline_mode = #tpu.pipeline_mode<synchronous>, transform_indices = @transform_2, window_bounds = array<i64: 1, 128>}, {transform_indices = @transform_3, window_bounds = array<i64: 1, 8, 8, 8>}, {transform_indices = @transform_4, window_bounds = array<i64: 1, 8, 8, 8>}]} {
    %c0 = arith.constant 0 : index
    %c0_0 = arith.constant 0 : index
    %c0_1 = arith.constant 0 : index
    %0 = vector.load %arg1[%c0, %c0_0, %c0_1] : memref<1x100x128xbf16, #tpu.memory_space<vmem>>, vector<1x100x128xbf16>
    %1 = vector.shape_cast %0 : vector<1x100x128xbf16> to vector<100x128xbf16>
    %2 = arith.extf %1 : vector<100x128xbf16> to vector<100x128xf32>
    %c0_2 = arith.constant 0 : index
    %c0_3 = arith.constant 0 : index
    %3 = vector.load %arg2[%c0_2, %c0_3] : memref<1x128xf32, #tpu.memory_space<vmem>>, vector<1x128xf32>
    %4 = vector.broadcast %3 : vector<1x128xf32> to vector<100x128xf32>
    %5 = arith.mulf %2, %4 : vector<100x128xf32>
    %c0_4 = arith.constant 0 : index
    %c0_5 = arith.constant 0 : index
    %6 = vector.load %arg3[%c0_4, %c0_5] : memref<1x128xf32, #tpu.memory_space<vmem>>, vector<1x128xf32>
    %7 = vector.broadcast %6 : vector<1x128xf32> to vector<100x128xf32>
    %8 = arith.addf %5, %7 : vector<100x128xf32>
    %9 = vector.extract_strided_slice %8 {offsets = [11, 0], sizes = [8, 8], strides = [1, 1]} : vector<100x128xf32> to vector<8x8xf32>
    %c0_6 = arith.constant 0 : index
    %c0_7 = arith.constant 0 : index
    %c0_8 = arith.constant 0 : index
    %c0_9 = arith.constant 0 : index
    %10 = vector.load %arg4[%c0_6, %c0_7, %c0_8, %c0_9] : memref<1x8x8x8xbf16, #tpu.memory_space<vmem>>, vector<1x1x8x8xbf16>
    %11 = vector.shape_cast %10 : vector<1x1x8x8xbf16> to vector<8x8xbf16>
    %12 = arith.extf %11 : vector<8x8xbf16> to vector<8x8xf32>
    %13 = arith.addf %9, %12 : vector<8x8xf32>
    %cst = arith.constant 0.000000e+00 : f32
    %14 = vector.broadcast %cst : f32 to vector<8x8xf32>
    %15 = arith.maximumf %13, %14 : vector<8x8xf32>
    %c0_10 = arith.constant 0 : index
    %c0_11 = arith.constant 0 : index
    %c0_12 = arith.constant 0 : index
    %c0_13 = arith.constant 0 : index
    %16 = vector.load %arg5[%c0_10, %c0_11, %c0_12, %c0_13] : memref<1x8x8x8xf32, #tpu.memory_space<vmem>>, vector<1x1x8x8xf32>
    %17 = vector.shape_cast %16 : vector<1x1x8x8xf32> to vector<8x8xf32>
    %18 = vector.shape_cast %15 : vector<8x8xf32> to vector<1x1x8x8xf32>
    tpu.vector_store %arg5[%c0_10, %c0_11, %c0_12, %c0_13], %18 {strides = array<i32>} : memref<1x8x8x8xf32, #tpu.memory_space<vmem>>, vector<1x1x8x8xf32>,
    %19 = vector.extract_strided_slice %8 {offsets = [21, 0], sizes = [8, 8], strides = [1, 1]} : vector<100x128xf32> to vector<8x8xf32>
    %c0_14 = arith.constant 0 : index
    %c1 = arith.constant 1 : index
    %c0_15 = arith.constant 0 : index
    %c0_16 = arith.constant 0 : index
    %20 = vector.load %arg4[%c0_14, %c1, %c0_15, %c0_16] : memref<1x8x8x8xbf16, #tpu.memory_space<vmem>>, vector<1x1x8x8xbf16>
    %21 = vector.shape_cast %20 : vector<1x1x8x8xbf16> to vector<8x8xbf16>
    %22 = arith.extf %21 : vector<8x8xbf16> to vector<8x8xf32>
    %23 = arith.addf %19, %22 : vector<8x8xf32>
    %cst_17 = arith.constant 0.000000e+00 : f32
    %24 = vector.broadcast %cst_17 : f32 to vector<8x8xf32>
    %25 = arith.maximumf %23, %24 : vector<8x8xf32>
    %c0_18 = arith.constant 0 : index
    %c1_19 = arith.constant 1 : index
    %c0_20 = arith.constant 0 : index
    %c0_21 = arith.constant 0 : index
    %26 = vector.load %arg5[%c0_18, %c1_19, %c0_20, %c0_21] : memref<1x8x8x8xf32, #tpu.memory_space<vmem>>, vector<1x1x8x8xf32>
    %27 = vector.shape_cast %26 : vector<1x1x8x8xf32> to vector<8x8xf32>
    %28 = vector.shape_cast %25 : vector<8x8xf32> to vector<1x1x8x8xf32>
    tpu.vector_store %arg5[%c0_18, %c1_19, %c0_20, %c0_21], %28 {strides = array<i32>} : memref<1x8x8x8xf32, #tpu.memory_space<vmem>>, vector<1x1x8x8xf32>,
    %29 = vector.extract_strided_slice %8 {offsets = [31, 0], sizes = [8, 8], strides = [1, 1]} : vector<100x128xf32> to vector<8x8xf32>
    %c0_22 = arith.constant 0 : index
    %c2 = arith.constant 2 : index
    %c0_23 = arith.constant 0 : index
    %c0_24 = arith.constant 0 : index
    %30 = vector.load %arg4[%c0_22, %c2, %c0_23, %c0_24] : memref<1x8x8x8xbf16, #tpu.memory_space<vmem>>, vector<1x1x8x8xbf16>
    %31 = vector.shape_cast %30 : vector<1x1x8x8xbf16> to vector<8x8xbf16>
    %32 = arith.extf %31 : vector<8x8xbf16> to vector<8x8xf32>
    %33 = arith.addf %29, %32 : vector<8x8xf32>
    %cst_25 = arith.constant 0.000000e+00 : f32
    %34 = vector.broadcast %cst_25 : f32 to vector<8x8xf32>
    %35 = arith.maximumf %33, %34 : vector<8x8xf32>
    %c0_26 = arith.constant 0 : index
    %c2_27 = arith.constant 2 : index
    %c0_28 = arith.constant 0 : index
    %c0_29 = arith.constant 0 : index
    %36 = vector.load %arg5[%c0_26, %c2_27, %c0_28, %c0_29] : memref<1x8x8x8xf32, #tpu.memory_space<vmem>>, vector<1x1x8x8xf32>
    %37 = vector.shape_cast %36 : vector<1x1x8x8xf32> to vector<8x8xf32>
    %38 = vector.shape_cast %35 : vector<8x8xf32> to vector<1x1x8x8xf32>
    tpu.vector_store %arg5[%c0_26, %c2_27, %c0_28, %c0_29], %38 {strides = array<i32>} : memref<1x8x8x8xf32, #tpu.memory_space<vmem>>, vector<1x1x8x8xf32>,
    %39 = vector.extract_strided_slice %8 {offsets = [41, 0], sizes = [8, 8], strides = [1, 1]} : vector<100x128xf32> to vector<8x8xf32>
    %c0_30 = arith.constant 0 : index
    %c3 = arith.constant 3 : index
    %c0_31 = arith.constant 0 : index
    %c0_32 = arith.constant 0 : index
    %40 = vector.load %arg4[%c0_30, %c3, %c0_31, %c0_32] : memref<1x8x8x8xbf16, #tpu.memory_space<vmem>>, vector<1x1x8x8xbf16>
    %41 = vector.shape_cast %40 : vector<1x1x8x8xbf16> to vector<8x8xbf16>
    %42 = arith.extf %41 : vector<8x8xbf16> to vector<8x8xf32>
    %43 = arith.addf %39, %42 : vector<8x8xf32>
    %cst_33 = arith.constant 0.000000e+00 : f32
    %44 = vector.broadcast %cst_33 : f32 to vector<8x8xf32>
    %45 = arith.maximumf %43, %44 : vector<8x8xf32>
    %c0_34 = arith.constant 0 : index
    %c3_35 = arith.constant 3 : index
    %c0_36 = arith.constant 0 : index
    %c0_37 = arith.constant 0 : index
    %46 = vector.load %arg5[%c0_34, %c3_35, %c0_36, %c0_37] : memref<1x8x8x8xf32, #tpu.memory_space<vmem>>, vector<1x1x8x8xf32>
    %47 = vector.shape_cast %46 : vector<1x1x8x8xf32> to vector<8x8xf32>
    %48 = vector.shape_cast %45 : vector<8x8xf32> to vector<1x1x8x8xf32>
    tpu.vector_store %arg5[%c0_34, %c3_35, %c0_36, %c0_37], %48 {strides = array<i32>} : memref<1x8x8x8xf32, #tpu.memory_space<vmem>>, vector<1x1x8x8xf32>,
    %49 = vector.extract_strided_slice %8 {offsets = [51, 0], sizes = [8, 8], strides = [1, 1]} : vector<100x128xf32> to vector<8x8xf32>
    %c0_38 = arith.constant 0 : index
    %c4 = arith.constant 4 : index
    %c0_39 = arith.constant 0 : index
    %c0_40 = arith.constant 0 : index
    %50 = vector.load %arg4[%c0_38, %c4, %c0_39, %c0_40] : memref<1x8x8x8xbf16, #tpu.memory_space<vmem>>, vector<1x1x8x8xbf16>
    %51 = vector.shape_cast %50 : vector<1x1x8x8xbf16> to vector<8x8xbf16>
    %52 = arith.extf %51 : vector<8x8xbf16> to vector<8x8xf32>
    %53 = arith.addf %49, %52 : vector<8x8xf32>
    %cst_41 = arith.constant 0.000000e+00 : f32
    %54 = vector.broadcast %cst_41 : f32 to vector<8x8xf32>
    %55 = arith.maximumf %53, %54 : vector<8x8xf32>
    %c0_42 = arith.constant 0 : index
    %c4_43 = arith.constant 4 : index
    %c0_44 = arith.constant 0 : index
    %c0_45 = arith.constant 0 : index
    %56 = vector.load %arg5[%c0_42, %c4_43, %c0_44, %c0_45] : memref<1x8x8x8xf32, #tpu.memory_space<vmem>>, vector<1x1x8x8xf32>
    %57 = vector.shape_cast %56 : vector<1x1x8x8xf32> to vector<8x8xf32>
    %58 = vector.shape_cast %55 : vector<8x8xf32> to vector<1x1x8x8xf32>
    tpu.vector_store %arg5[%c0_42, %c4_43, %c0_44, %c0_45], %58 {strides = array<i32>} : memref<1x8x8x8xf32, #tpu.memory_space<vmem>>, vector<1x1x8x8xf32>,
    %59 = vector.extract_strided_slice %8 {offsets = [61, 0], sizes = [8, 8], strides = [1, 1]} : vector<100x128xf32> to vector<8x8xf32>
    %c0_46 = arith.constant 0 : index
    %c5 = arith.constant 5 : index
    %c0_47 = arith.constant 0 : index
    %c0_48 = arith.constant 0 : index
    %60 = vector.load %arg4[%c0_46, %c5, %c0_47, %c0_48] : memref<1x8x8x8xbf16, #tpu.memory_space<vmem>>, vector<1x1x8x8xbf16>
    %61 = vector.shape_cast %60 : vector<1x1x8x8xbf16> to vector<8x8xbf16>
    %62 = arith.extf %61 : vector<8x8xbf16> to vector<8x8xf32>
    %63 = arith.addf %59, %62 : vector<8x8xf32>
    %cst_49 = arith.constant 0.000000e+00 : f32
    %64 = vector.broadcast %cst_49 : f32 to vector<8x8xf32>
    %65 = arith.maximumf %63, %64 : vector<8x8xf32>
    %c0_50 = arith.constant 0 : index
    %c5_51 = arith.constant 5 : index
    %c0_52 = arith.constant 0 : index
    %c0_53 = arith.constant 0 : index
    %66 = vector.load %arg5[%c0_50, %c5_51, %c0_52, %c0_53] : memref<1x8x8x8xf32, #tpu.memory_space<vmem>>, vector<1x1x8x8xf32>
    %67 = vector.shape_cast %66 : vector<1x1x8x8xf32> to vector<8x8xf32>
    %68 = vector.shape_cast %65 : vector<8x8xf32> to vector<1x1x8x8xf32>
    tpu.vector_store %arg5[%c0_50, %c5_51, %c0_52, %c0_53], %68 {strides = array<i32>} : memref<1x8x8x8xf32, #tpu.memory_space<vmem>>, vector<1x1x8x8xf32>,
    %69 = vector.extract_strided_slice %8 {offsets = [71, 0], sizes = [8, 8], strides = [1, 1]} : vector<100x128xf32> to vector<8x8xf32>
    %c0_54 = arith.constant 0 : index
    %c6 = arith.constant 6 : index
    %c0_55 = arith.constant 0 : index
    %c0_56 = arith.constant 0 : index
    %70 = vector.load %arg4[%c0_54, %c6, %c0_55, %c0_56] : memref<1x8x8x8xbf16, #tpu.memory_space<vmem>>, vector<1x1x8x8xbf16>
    %71 = vector.shape_cast %70 : vector<1x1x8x8xbf16> to vector<8x8xbf16>
    %72 = arith.extf %71 : vector<8x8xbf16> to vector<8x8xf32>
    %73 = arith.addf %69, %72 : vector<8x8xf32>
    %cst_57 = arith.constant 0.000000e+00 : f32
    %74 = vector.broadcast %cst_57 : f32 to vector<8x8xf32>
    %75 = arith.maximumf %73, %74 : vector<8x8xf32>
    %c0_58 = arith.constant 0 : index
    %c6_59 = arith.constant 6 : index
    %c0_60 = arith.constant 0 : index
    %c0_61 = arith.constant 0 : index
    %76 = vector.load %arg5[%c0_58, %c6_59, %c0_60, %c0_61] : memref<1x8x8x8xf32, #tpu.memory_space<vmem>>, vector<1x1x8x8xf32>
    %77 = vector.shape_cast %76 : vector<1x1x8x8xf32> to vector<8x8xf32>
    %78 = vector.shape_cast %75 : vector<8x8xf32> to vector<1x1x8x8xf32>
    tpu.vector_store %arg5[%c0_58, %c6_59, %c0_60, %c0_61], %78 {strides = array<i32>} : memref<1x8x8x8xf32, #tpu.memory_space<vmem>>, vector<1x1x8x8xf32>,
    %79 = vector.extract_strided_slice %8 {offsets = [81, 0], sizes = [8, 8], strides = [1, 1]} : vector<100x128xf32> to vector<8x8xf32>
    %c0_62 = arith.constant 0 : index
    %c7 = arith.constant 7 : index
    %c0_63 = arith.constant 0 : index
    %c0_64 = arith.constant 0 : index
    %80 = vector.load %arg4[%c0_62, %c7, %c0_63, %c0_64] : memref<1x8x8x8xbf16, #tpu.memory_space<vmem>>, vector<1x1x8x8xbf16>
    %81 = vector.shape_cast %80 : vector<1x1x8x8xbf16> to vector<8x8xbf16>
    %82 = arith.extf %81 : vector<8x8xbf16> to vector<8x8xf32>
    %83 = arith.addf %79, %82 : vector<8x8xf32>
    %cst_65 = arith.constant 0.000000e+00 : f32
    %84 = vector.broadcast %cst_65 : f32 to vector<8x8xf32>
    %85 = arith.maximumf %83, %84 : vector<8x8xf32>
    %c0_66 = arith.constant 0 : index
    %c7_67 = arith.constant 7 : index
    %c0_68 = arith.constant 0 : index
    %c0_69 = arith.constant 0 : index
    %86 = vector.load %arg5[%c0_66, %c7_67, %c0_68, %c0_69] : memref<1x8x8x8xf32, #tpu.memory_space<vmem>>, vector<1x1x8x8xf32>
    %87 = vector.shape_cast %86 : vector<1x1x8x8xf32> to vector<8x8xf32>
    %88 = vector.shape_cast %85 : vector<8x8xf32> to vector<1x1x8x8xf32>
    tpu.vector_store %arg5[%c0_66, %c7_67, %c0_68, %c0_69], %88 {strides = array<i32>} : memref<1x8x8x8xf32, #tpu.memory_space<vmem>>, vector<1x1x8x8xf32>,
    return
  }
  func.func @transform_0(%arg0: i32) -> (i32, i32, i32) {
    %c0_i32 = arith.constant 0 : i32
    %c0_i32_0 = arith.constant 0 : i32
    %c0_i32_1 = arith.constant 0 : i32
    return %arg0, %c0_i32, %c0_i32_0 : i32, i32, i32
  }
  func.func @transform_1(%arg0: i32) -> (i32, i32) {
    %c0_i32 = arith.constant 0 : i32
    %c0_i32_0 = arith.constant 0 : i32
    %c0_i32_1 = arith.constant 0 : i32
    return %c0_i32, %c0_i32_0 : i32, i32
  }
  func.func @transform_2(%arg0: i32) -> (i32, i32) {
    %c0_i32 = arith.constant 0 : i32
    %c0_i32_0 = arith.constant 0 : i32
    %c0_i32_1 = arith.constant 0 : i32
    return %c0_i32, %c0_i32_0 : i32, i32
  }
  func.func @transform_3(%arg0: i32) -> (i32, i32, i32, i32) {
    %c0_i32 = arith.constant 0 : i32
    %c0_i32_0 = arith.constant 0 : i32
    %c0_i32_1 = arith.constant 0 : i32
    %c0_i32_2 = arith.constant 0 : i32
    return %arg0, %c0_i32, %c0_i32_0, %c0_i32_1 : i32, i32, i32, i32
  }
  func.func @transform_4(%arg0: i32) -> (i32, i32, i32, i32) {
    %c0_i32 = arith.constant 0 : i32
    %c0_i32_0 = arith.constant 0 : i32
    %c0_i32_1 = arith.constant 0 : i32
    %c0_i32_2 = arith.constant 0 : i32
    return %arg0, %c0_i32, %c0_i32_0, %c0_i32_1 : i32, i32, i32, i32
  }
}

</mosaic_0001>

<bundles_post_ra>
// kernel: basic_block_forward.3
= control target key start
LH: loop header
LB: loop body
LE: loop exit
PB: predicated region body
PF: predicated region fallthrough
CT: control target
= control target key end

     0   :  { %s677_s12 = smov 0   ;;  %s868_s0 = inlined_call_operand.vmem [shape: bf16[2,64,48], index: 0, kind: input, shape index: {}]   ;;  %s869_s1 = inlined_call_operand.vmem [shape: bf16[48,128], index: 1, kind: input, shape index: {}]   ;;  %s870_s2 = inlined_call_operand.vmem [shape: bf16[2,100,128], index: 2, kind: output, shape index: {0}]   ;;  %s871_s3 = inlined_call_operand.vmem [shape: f32[2,2,128], index: 3, kind: output, shape index: {1}]  }
   0x1 LB: > { %s578_s13 = sadd.s32 4294967295, %s654_s12   ;;  %p582_p0 = scmp.ge.s32.totalorder %s654_s12, 1  ;;  %s654_s12 = sphi %s677_s12, %s14_s12  }
   0x2   : > { %p140_p1 = scmp.lt.s32.totalorder %s654_s12, 3 }
   0x4   : > { %p141_p2 = pnand %p582_p0, %p140_p1 }
   0x5   : > { %p168_p3 = scmp.lt.s32.totalorder (!%p141_p2), %s578_s13, 1 }
   0x6   : > { %144 = sbr.rel (%p141_p2) target bundleno = 192 (0xc0), region = 28 }
   0xb   : > { %v628_v0 = vld [vmem:[%s869_s1 + $0x10] sm:$0xff]  ;;  %v627_v1 = vld [vmem:[%s869_s1 + $0x8] sm:$0xff]  ;;  %s889_s13 = smov (!%p168_p3, %s578_s13), 1  ;;  %v626_v2 = vld [vmem:[%s869_s1] sm:$0xff]  ;;  %vm235_vm0 = vcmask 392192   ;;  %v656_v7 = vmov 0  }
   0xc   : > { %253 = vmatpush.bf16.msra.mxu0 %v628_v0  ;;  %629 = vmatpush.bf16.msra.mxu1 %v628_v0  ;;  %s621_s18 = sshll.u32 %s889_s13, 5  ;;  %s638_s24 = smul.u32 52, %s889_s13  ;;  %vm350_vm1 = vcmask 1043459   ;;  %vm351_vm2 = vsmask.f32 7950  ;;  %vm302_vm3 = vcmask 1043457  }
   0xd   : > { %630 = vmatpush.bf16.msra.mxu2 %v628_v0  ;;  %631 = vmatpush.bf16.msra.mxu3 %v628_v0  ;;  %s172_s23 = scalar_lea.vmem %s868_s0, %s621_s18  ;;  %vm303_vm4 = vsmask.f32 7942  ;;  %vm309_vm5 = vsmask.f32 1280  ;;  %vm308_vm6 = vcmask 1041408   ;;  %vm727_vm7 = vmand %vm350_vm1, %vm351_vm2  ;;  %vm356_vm8 = vcmask 1043456  }
   0xe   : > { %v622_v3 = vld [vmem:[%s172_s23] sm:$0xff]  ;;  %v623_v4 = vld [vmem:[%s172_s23 + $0x8] sm:$0xff]  ;;  %v624_v5 = vld [vmem:[%s172_s23 + $0x10] sm:$0xff]  ;;  %s704_s27 = scalar_lea.vmem %s870_s2, %s638_s24  ;;  %vm357_vm9 = vsmask.f32 3328  ;;  %vm326_vm11 = vcmask 1043458  }
   0xf   : > { %v625_v6 = vld [vmem:[%s172_s23 + $0x18] sm:$0xff]  ;;  %277 = vst [vmem:[%s704_s27] sm:$0xf] %v656_v7  ;;  %vm735_vm10 = vmand %vm302_vm3, %vm303_vm4  ;;  %vm327_vm12 = vsmask.f32 7946  ;;  %vm332_vm13 = vcmask 1042432   ;;  %vm378_vm2 = vcmask 1040384  }
  0x10   : > { %254 = vmatpush.bf16.msra.mxu0 %v627_v1  ;;  %632 = vmatpush.bf16.msra.mxu1 %v627_v1  ;;  %278 = vst [vmem:[%s704_s27 + $0x4] sm:$0xf] %v656_v7  ;;  %vm333_vm14 = vsmask.f32 2304  ;;  %vm741_vm15 = vmand %vm308_vm6, %vm309_vm5  ;;  %vm379_vm3 = vsmask.f32 256 }
  0x11   : > { %633 = vmatpush.bf16.msra.mxu2 %v627_v1  ;;  %634 = vmatpush.bf16.msra.mxu3 %v627_v1  ;;  %279 = vst [vmem:[%s704_s27 + $0x8] sm:$0xf] %v656_v7  ;;  %vm757_vm1 = vmand %vm356_vm8, %vm357_vm9  ;;  %s586_s28 = sshll.u32 %s889_s13, 1 }
  0x12   : > { %289 = vst [vmem:[%s704_s27 + $0x30] sm:$0x3] %v656_v7  ;;  %vm786_vm4 = vmand %vm326_vm11, %vm327_vm12  ;;  %s181_s4 = scalar_lea.vmem %s871_s3, %s586_s28 }
  0x13   : > { %280 = vst [vmem:[%s704_s27 + $0xc] sm:$0xf] %v656_v7  ;;  %vm799_vm5 = vmand %vm332_vm13, %vm333_vm14 }
  0x14   : > { %255 = vmatpush.bf16.msra.mxu0 %v626_v2  ;;  %635 = vmatpush.bf16.msra.mxu1 %v626_v2  ;;  %281 = vst [vmem:[%s704_s27 + $0x10] sm:$0xf] %v656_v7 }
  0x15   : > { %636 = vmatpush.bf16.msra.mxu2 %v626_v2  ;;  %637 = vmatpush.bf16.msra.mxu3 %v626_v2  ;;  %282 = vst [vmem:[%s704_s27 + $0x14] sm:$0xf] %v656_v7 }
  0x16   : > { %283 = vst [vmem:[%s704_s27 + $0x18] sm:$0xf] %v656_v7 }
  0x17   : > { %615 = vmatmul.msk.bf16.vlgmr.msra.gmra.mxu0 %vm235_vm0, %v622_v3  ;;  %616 = vmatmul.msk.bf16.vlgmr.msra.gmra.mxu1 %vm235_vm0, %v623_v4  ;;  %284 = vst [vmem:[%s704_s27 + $0x1c] sm:$0xf] %v656_v7  ;;  %v305_v20 = vld [vmem:[%s704_s27 + $0x4] sm:$0xe] }
  0x18   : > { %617 = vmatmul.msk.bf16.vlgmr.msra.gmra.mxu2 %vm235_vm0, %v624_v5  ;;  %618 = vmatmul.msk.bf16.vlgmr.msra.gmra.mxu3 %vm235_vm0, %v625_v6  ;;  %285 = vst [vmem:[%s704_s27 + $0x20] sm:$0xf] %v656_v7  ;;  %vm373_vm0 = vsmask.f32 7938  ;;  %v311_v30 = vld [vmem:[%s704_s27 + $0x8] sm:$0x3] }
  0x19   : > { %286 = vst [vmem:[%s704_s27 + $0x24] sm:$0xf] %v656_v7  ;;  %v329_v1 = vld [vmem:[%s704_s27 + $0x8] sm:$0xc]  ;;  %vm814_vm6 = vmand %vm356_vm8, %vm373_vm0 }
  0x1a   : > { %287 = vst [vmem:[%s704_s27 + $0x28] sm:$0xf] %v656_v7  ;;  %v353_v17 = vld [vmem:[%s704_s27 + $0xc] sm:$0x8] }
  0x1b   : > { %288 = vst [vmem:[%s704_s27 + $0x2c] sm:$0xf] %v656_v7  ;;  %v359_v33 = vld [vmem:[%s704_s27 + $0x10] sm:$0xf] }
  0x1d   : > { %v396_v56 = vld [vmem:[%s704_s27 + $0x18] sm:$0xe]  ;;  %v381_v32 = vld [vmem:[%s704_s27 + $0x18] sm:$0x1] }
  0x1e   : > { %v399_v3 = vld [vmem:[%s704_s27 + $0x1c] sm:$0x3] }
  0x1f   : > { %v432_v48 = vld [vmem:[%s704_s27 + $0x20] sm:$0x8] }
  0x20   : > { %v435_v4 = vld [vmem:[%s704_s27 + $0x24] sm:$0xf] }
  0x94   : > { %v719_v8 = vpop.f32.mrf.mxu0  ;;  %v721_v9 = vpop.f32.mrf.mxu1 }
  0x95   : > { %v290_v10 = vpack.c.bf16 %v719_v8, %v719_v8  ;;  %v338_v11 = vpack.c.bf16 %v721_v9, %v721_v9  ;;  %v468_v31 = vmul.f32 %v719_v8, %v719_v8  ;;  %v764_v34 = vmul.f32 %v721_v9, %v721_v9 }
  0x97   : > { %v292_v12 = vshrl.u32 %v290_v10, 16  ;;  %v295_v13 = vshll.u32 %v290_v10, 16  ;;  %v340_v14 = vshll.u32 %v338_v11, 16  ;;  %v343_v15 = vshrl.u32 %v338_v11, 16 }
  0x99   : > { %v294_v18 = vrot.slane %v292_v12, 6  ;;  %v297_v19 = vrot.slane %v295_v13, 7  ;;  %v342_v21 = vrot.slane %v340_v14, 5  ;;  %v345_v22 = vrot.slane %v343_v15, 4  ;;  %v335_v14 = vld [vmem:[%s704_s27 + $0xc] sm:$0x7] }
  0x9b   : > { %v298_v24 = vor.u32 %v297_v19, %v294_v18  ;;  %v346_v26 = vor.u32 %v345_v22, %v342_v21  ;;  %v354_v27 = vsel %vm727_vm7, %v342_v21, %v353_v17  ;;  %v747_v28 = vpop.f32.mrf.mxu2  ;;  %v749_v29 = vpop.f32.mrf.mxu3 }
  0x9c   : > { %355 = vst [vmem:[%s704_s27 + $0xc] sm:$0x8] %v354_v27  ;;  %v384_v35 = vpack.c.bf16 %v747_v28, %v747_v28  ;;  %v420_v36 = vpack.c.bf16 %v749_v29, %v749_v29  ;;  %v259_v37 = vpop.f32.mrf.mxu0  ;;  %v264_v51 = vpop.f32.mrf.mxu1  ;;  %v472_v27 = vmul.f32 %v747_v28, %v747_v28 }
  0x9d   : > { %v299_v38 = vrot.slane %v298_v24, 4  ;;  %v306_v39 = vsel %vm735_vm10, %v298_v24, %v305_v20  ;;  %v347_v40 = vrot.slane %v346_v26, 4  ;;  %v314_v41 = vpack.c.bf16 %v259_v37, %v259_v37 }
  0x9e   : > { %307 = vst [vmem:[%s704_s27 + $0x4] sm:$0xe] %v306_v39  ;;  %v386_v42 = vshrl.u32 %v384_v35, 16  ;;  %v389_v43 = vshll.u32 %v384_v35, 16  ;;  %v422_v44 = vshll.u32 %v420_v36, 16  ;;  %v425_v45 = vshrl.u32 %v420_v36, 16 }
  0x9f   : > { %v312_v46 = vsel %vm741_vm15, %v299_v38, %v311_v30  ;;  %v360_v47 = vsel %vm757_vm1, %v347_v40, %v359_v33  ;;  %v316_v49 = vshrl.u32 %v314_v41, 16  ;;  %v319_v50 = vshll.u32 %v314_v41, 16  ;;  %v375_v30 = vld [vmem:[%s704_s27 + $0x14] sm:$0xf] }
  0xa0   : > { %313 = vst [vmem:[%s704_s27 + $0x8] sm:$0x3] %v312_v46  ;;  %v388_v52 = vrot.slane %v386_v42, 6  ;;  %v391_v53 = vrot.slane %v389_v43, 7  ;;  %v424_v54 = vrot.slane %v422_v44, 5  ;;  %v427_v55 = vrot.slane %v425_v45, 4 }
  0xa1   : > { %361 = vst [vmem:[%s704_s27 + $0x10] sm:$0xf] %v360_v47  ;;  %v318_v57 = vrot.slane %v316_v49, 5  ;;  %v321_v58 = vrot.slane %v319_v50, 6  ;;  %v455_v59 = vadd.f32 %v259_v37, %v719_v8  ;;  %v469_v60 = vmul.f32 %v259_v37, %v259_v37  ;;  %v414_v50 = vld [vmem:[%s704_s27 + $0x1c] sm:$0xc] }
  0xa2   : > { %v392_v61 = vor.u32 %v391_v53, %v388_v52  ;;  %v428_v62 = vor.u32 %v427_v55, %v424_v54  ;;  %v433_v63 = vsel %vm727_vm7, %v424_v54, %v432_v48  ;;  %v362_v2 = vpack.c.bf16 %v264_v51, %v264_v51  ;;  %vm827_vm7 = vmand %vm378_vm2, %vm379_vm3  ;;  %v449_v55 = vld [vmem:[%s704_s27 + $0x28] sm:$0xf] }
  0xa3   : > { %434 = vst [vmem:[%s704_s27 + $0x20] sm:$0x8] %v433_v63  ;;  %v322_v5 = vor.u32 %v321_v58, %v318_v57  ;;  %v476_v6 = vadd.f32 %v469_v60, %v468_v31  ;;  %v456_v7 = vadd.f32 %v455_v59, %v721_v9  ;;  %v471_v8 = vmul.f32 %v264_v51, %v264_v51  ;;  %v269_v16 = vpop.f32.mrf.mxu2  ;;  %v274_v20 = vpop.f32.mrf.mxu3  ;;  %v417_v58 = vld [vmem:[%s704_s27 + $0x20] sm:$0x7] }
  0xa4   : > { %v393_v10 = vrot.slane %v392_v61, 4  ;;  %v397_v11 = vsel %vm735_vm10, %v392_v61, %v396_v56  ;;  %v429_v12 = vrot.slane %v428_v62, 4  ;;  %v364_v15 = vshrl.u32 %v362_v2, 16  ;;  %v452_v56 = vld [vmem:[%s704_s27 + $0x2c] sm:$0x1] }
  0xa5   : > { %398 = vst [vmem:[%s704_s27 + $0x18] sm:$0xe] %v397_v11  ;;  %v323_v9 = vrot.slane %v322_v5, 4  ;;  %v330_v17 = vsel %vm786_vm4, %v322_v5, %v329_v1  ;;  %v367_v18 = vshll.u32 %v362_v2, 16  ;;  %v457_v19 = vadd.f32 %v456_v7, %v264_v51 }
  0xa6   : > { %v400_v21 = vsel %vm741_vm15, %v393_v10, %v399_v3  ;;  %v436_v22 = vsel %vm757_vm1, %v429_v12, %v435_v4  ;;  %331 = vst [vmem:[%s704_s27 + $0x8] sm:$0xc] %v330_v17  ;;  %v366_v23 = vrot.slane %v364_v15, 7  ;;  %v477_v26 = vadd.f32 %v476_v6, %v764_v34 }
  0xa7   : > { %401 = vst [vmem:[%s704_s27 + $0x1c] sm:$0x3] %v400_v21  ;;  %v336_v25 = vsel %vm799_vm5, %v323_v9, %v335_v14  ;;  %v402_v33 = vpack.c.bf16 %v269_v16, %v269_v16  ;;  %v458_v35 = vadd.f32 %v457_v19, %v747_v28  ;;  %v438_v38 = vpack.c.bf16 %v274_v20, %v274_v20 }
  0xa8   : > { %437 = vst [vmem:[%s704_s27 + $0x24] sm:$0xf] %v436_v22  ;;  %v369_v34 = vor.u32 %v367_v18, %v366_v23  ;;  %v370_v36 = vrot.slane %v366_v23, 4  ;;  %v478_v37 = vadd.f32 %v477_v26, %v471_v8  ;;  %v473_v42 = vmul.f32 %v269_v16, %v269_v16 }
  0xa9   : > { %337 = vst [vmem:[%s704_s27 + $0xc] sm:$0x7] %v336_v25  ;;  %v404_v39 = vshrl.u32 %v402_v33, 16  ;;  %v407_v40 = vshll.u32 %v402_v33, 16  ;;  %v459_v41 = vadd.f32 %v458_v35, %v269_v16  ;;  %v440_v45 = vshrl.u32 %v438_v38, 16 }
  0xaa   : > { %v376_v43 = vsel %vm814_vm6, %v369_v34, %v375_v30  ;;  %v382_v28 = vsel %vm827_vm7, %v370_v36, %v381_v32  ;;  %v479_v44 = vadd.f32 %v478_v37, %v472_v27  ;;  %v474_v49 = vmul.f32 %v749_v29, %v749_v29 }
  0xab   : > { %377 = vst [vmem:[%s704_s27 + $0x14] sm:$0xf] %v376_v43  ;;  %v406_v46 = vrot.slane %v404_v39, 5  ;;  %v409_v47 = vrot.slane %v407_v40, 6  ;;  %v460_v48 = vadd.f32 %v459_v41, %v749_v29  ;;  %v442_v52 = vrot.slane %v440_v45, 7 }
  0xac   : > { %383 = vst [vmem:[%s704_s27 + $0x18] sm:$0x1] %v382_v28  ;;  %v480_v51 = vadd.f32 %v479_v44, %v473_v42  ;;  %v443_v53 = vshll.u32 %v438_v38, 16  ;;  %v475_v61 = vmul.f32 %v274_v20, %v274_v20 }
  0xad   : > { %v410_v54 = vor.u32 %v409_v47, %v406_v46  ;;  %v461_v57 = vadd.f32 %v460_v48, %v274_v20  ;;  %v446_v60 = vrot.slane %v442_v52, 4 }
  0xae   : > { %v445_v59 = vor.u32 %v443_v53, %v442_v52  ;;  %v481_v62 = vadd.f32 %v480_v51, %v474_v49 }
  0xaf   : > { %v411_v63 = vrot.slane %v410_v54, 4  ;;  %v415_v29 = vsel %vm786_vm4, %v410_v54, %v414_v50  ;;  %v462_v1 = vrot.slane %v461_v57, 4  ;;  %v453_v3 = vsel %vm827_vm7, %v446_v60, %v452_v56 }
  0xb0   : > { %416 = vst [vmem:[%s704_s27 + $0x1c] sm:$0xc] %v415_v29  ;;  %v450_v2 = vsel %vm814_vm6, %v445_v59, %v449_v55  ;;  %v482_v4 = vadd.f32 %v481_v62, %v475_v61 }
  0xb1   : > { %v418_v5 = vsel %vm799_vm5, %v411_v63, %v417_v58  ;;  %451 = vst [vmem:[%s704_s27 + $0x28] sm:$0xf] %v450_v2  ;;  %v463_v6 = vadd.f32 %v462_v1, %v461_v57 }
  0xb2   : > { %419 = vst [vmem:[%s704_s27 + $0x20] sm:$0x7] %v418_v5  ;;  %v483_v7 = vrot.slane %v482_v4, 4 }
  0xb3   : > { %454 = vst [vmem:[%s704_s27 + $0x2c] sm:$0x1] %v453_v3  ;;  %v464_v0 = vrot.slane %v463_v6, 2 }
  0xb4   : > { %v484_v8 = vadd.f32 %v483_v7, %v482_v4 }
  0xb5   : > { %v465_v10 = vadd.f32 %v464_v0, %v463_v6 }
  0xb6   : > { %v485_v11 = vrot.slane %v484_v8, 2 }
  0xb7   : > { %v466_v12 = vrot.slane %v465_v10, 1 }
  0xb8   : > { %v486_v14 = vadd.f32 %v485_v11, %v484_v8 }
  0xb9   : > { %v467_v16 = vadd.f32 %v466_v12, %v465_v10 }
  0xba   : > { %v487_v15 = vrot.slane %v486_v14, 1 }
  0xbc   : > { %v488_v13 = vadd.f32 %v487_v15, %v486_v14 }
  0xbe   : > { %v490_v9 = vsel %vm378_vm2, %v467_v16, %v488_v13 }
  0xbf   : > { %491 = vst [vmem:[%s181_s4] sm:$0x3] %v490_v9 }
  0xc0 PF: > { %s14_s12 = sadd.s32 1, %s654_s12  }
  0xc1   : > { %p11_p4 = scmp.ge.s32.totalorder %s14_s12, 4  }
  0xc3   :  { %13 = sbr.rel (!%p11_p4) target bundleno = 1 (0x1), region = 70 }

// kernel: basic_block_forward.5
= control target key start
LH: loop header
LB: loop body
LE: loop exit
PB: predicated region body
PF: predicated region fallthrough
CT: control target
= control target key end

     0   :  { %s551_s15 = smov 0   ;;  %s656_s0 = inlined_call_operand.vmem [shape: bf16[2,100,128], index: 0, kind: input, shape index: {}]   ;;  %s657_s1 = inlined_call_operand.vmem [shape: f32[1,128], index: 1, kind: input, shape index: {}]   ;;  %s658_s2 = inlined_call_operand.vmem [shape: f32[1,128], index: 2, kind: input, shape index: {}]   ;;  %s659_s3 = inlined_call_operand.vmem [shape: bf16[2,8,8,8], index: 3, kind: input, shape index: {}]   ;;  %s660_s4 = inlined_call_operand.vmem [shape: f32[2,8,8,8], index: 4, kind: output, shape index: {}]  }
   0x1 LB: > { %s447_s16 = sadd.s32 4294967295, %s524_s15   ;;  %p451_p0 = scmp.ge.s32.totalorder %s524_s15, 1  ;;  %s524_s15 = sphi %s551_s15, %s14_s15  }
   0x2   : > { %p172_p1 = scmp.lt.s32.totalorder %s524_s15, 3 }
   0x4   : > { %p173_p2 = pnand %p451_p0, %p172_p1 }
   0x5   : > { %p203_p3 = scmp.lt.s32.totalorder (!%p173_p2), %s447_s16, 1 }
   0x6   : > { %176 = sbr.rel (%p173_p2) target bundleno = 42 (0x2a), region = 36 }
   0xb   : > { %s662_s16 = smov (!%p203_p3, %s447_s16), 1  ;;  %v576_v0 = vld [vmem:[%s657_s1] ss:$0 sm:$0xff]  ;;  %vm279_vm0 = vcmask 64515   ;;  %vm281_vm1 = vcmask 59392   ;;  %vm294_vm2 = vcmask 64517  }
   0xc   : > { %s507_s17 = smul.u32 52, %s662_s16  ;;  %s480_s18 = sshll.u32 %s662_s16, 5  ;;  %v586_v11 = vld [vmem:[%s658_s2] ss:$0 sm:$0xff]  ;;  %vm296_vm3 = vcmask 61440   ;;  %vm309_vm4 = vcmask 64519  }
   0xd   : > { %s566_s21 = scalar_lea.vmem %s659_s3, %s480_s18  ;;  %s481_s29 = sshll.u32 %s662_s16, 6  ;;  %vm311_vm5 = vcmask 63488   ;;  %vm324_vm6 = vcmask 64513   ;;  %vm326_vm7 = vcmask 57344  }
   0xe   : > { %s571_s24 = scalar_lea.vmem %s656_s0, %s507_s17  ;;  %v270_v1 = vld [vmem:[%s566_s21] sm:$0xff]   ;;  %v460_v2 = vld [vmem:[%s566_s21 + $0x8] sm:$0xff]   ;;  %v466_v16 = vld [vmem:[%s566_s21 + $0x10] sm:$0xff]   ;;  %s605_s6 = scalar_lea.vmem %s660_s4, %s481_s29 }
   0xf   : > { %v218_v3 = vld [vmem:[%s571_s24 + $0x4] sm:$0xf]  ;;  %v271_v4 = vunpack.c.l.bf16 %v270_v1  ;;  %v502_v5 = vld [vmem:[%s571_s24 + $0x8] sm:$0xff]   ;;  %v285_v6 = vunpack.c.h.bf16 %v270_v1  ;;  %v300_v7 = vunpack.c.l.bf16 %v460_v2  ;;  %v503_v8 = vld [vmem:[%s571_s24 + $0x10] sm:$0xff]   ;;  %v315_v9 = vunpack.c.h.bf16 %v460_v2 }
  0x10   : > { %v229_v10 = vunpack.c.l.bf16 %v218_v3  ;;  %v484_v12 = vunpack.c.l.bf16 %v502_v5  ;;  %v485_v13 = vunpack.c.h.bf16 %v502_v5  ;;  %v488_v14 = vunpack.c.l.bf16 %v503_v8  ;;  %v504_v15 = vld [vmem:[%s571_s24 + $0x18] sm:$0xff]   ;;  %v505_v45 = vld [vmem:[%s571_s24 + $0x20] sm:$0xff]   ;;  %v506_v51 = vld [vmem:[%s571_s24 + $0x28] sm:$0xff]  }
  0x11   : > { %v273_v17 = vrot.slane %v271_v4, 5  ;;  %v287_v18 = vrot.slane %v285_v6, 3  ;;  %v302_v19 = vrot.slane %v300_v7, 1  ;;  %v489_v20 = vunpack.c.h.bf16 %v503_v8  ;;  %v472_v50 = vld [vmem:[%s566_s21 + $0x18] sm:$0xff]  }
  0x12   : > { %v244_v21 = vmul.f32 %v576_v0, %v229_v10  ;;  %v245_v22 = vmul.f32 %v576_v0, %v484_v12  ;;  %v246_v23 = vmul.f32 %v576_v0, %v485_v13  ;;  %v247_v24 = vmul.f32 %v576_v0, %v488_v14 }
  0x13   : > { %v248_v25 = vmul.f32 %v576_v0, %v489_v20  ;;  %v317_v26 = vrot.slane %v315_v9, 7  ;;  %v492_v27 = vunpack.c.l.bf16 %v504_v15  ;;  %v330_v28 = vunpack.c.l.bf16 %v466_v16 }
  0x14   : > { %v259_v29 = vadd.f32 %v586_v11, %v244_v21  ;;  %v260_v30 = vadd.f32 %v586_v11, %v245_v22  ;;  %v261_v31 = vadd.f32 %v586_v11, %v246_v23  ;;  %v262_v32 = vadd.f32 %v586_v11, %v247_v24 }
  0x15   : > { %v263_v33 = vadd.f32 %v586_v11, %v248_v25  ;;  %v249_v34 = vmul.f32 %v576_v0, %v492_v27  ;;  %v332_v35 = vrot.slane %v330_v28, 5  ;;  %v493_v36 = vunpack.c.h.bf16 %v504_v15 }
  0x16   : > { %v275_v37 = vadd.f32 %v273_v17, %v259_v29  ;;  %v276_v38 = vadd.f32 %v273_v17, %v260_v30  ;;  %v289_v39 = vadd.f32 %v287_v18, %v260_v30  ;;  %v290_v40 = vadd.f32 %v287_v18, %v261_v31 }
  0x17   : > { %v304_v41 = vadd.f32 %v302_v19, %v261_v31  ;;  %v305_v42 = vadd.f32 %v302_v19, %v262_v32  ;;  %v319_v43 = vadd.f32 %v317_v26, %v263_v33  ;;  %v264_v44 = vadd.f32 %v586_v11, %v249_v34 }
  0x18   : > { %v277_v46 = vmax.f32 %v275_v37, 0.0  ;;  %v278_v47 = vmax.f32 %v276_v38, 0.0  ;;  %v291_v48 = vmax.f32 %v289_v39, 0.0  ;;  %v292_v49 = vmax.f32 %v290_v40, 0.0 }
  0x19   : > { %v306_v52 = vmax.f32 %v304_v41, 0.0  ;;  %v307_v53 = vmax.f32 %v305_v42, 0.0  ;;  %v321_v54 = vmax.f32 %v319_v43, 0.0  ;;  %v320_v55 = vadd.f32 %v317_v26, %v264_v44 }
  0x1a   : > { %280 = vst.msk [vmem:[%s605_s6 - $0x3] sm:$0xf8] %vm279_vm0, %v277_v46  ;;  %v334_v56 = vadd.f32 %v332_v35, %v264_v44  ;;  %v250_v57 = vmul.f32 %v576_v0, %v493_v36  ;;  %v343_v58 = vunpack.c.h.bf16 %v466_v16  ;;  %v496_v59 = vunpack.c.l.bf16 %v505_v45 }
  0x1b   : > { %282 = vst.msk [vmem:[%s605_s6 + $0x5] sm:$0x7] %vm281_vm1, %v278_v47  ;;  %v322_v60 = vmax.f32 %v320_v55, 0.0  ;;  %v356_v61 = vunpack.c.l.bf16 %v472_v50  ;;  %v497_v62 = vunpack.c.h.bf16 %v505_v45  ;;  %v500_v63 = vunpack.c.l.bf16 %v506_v51 }
  0x1c   : > { %458 = vst.msk [vmem:[%s605_s6 + $0x3] sm:$0xe0] %vm294_vm2, %v291_v48  ;;  %v336_v1 = vmax.f32 %v334_v56, 0.0  ;;  %v265_v2 = vadd.f32 %v586_v11, %v250_v57  ;;  %v345_v3 = vrot.slane %v343_v58, 3  ;;  %v251_v4 = vmul.f32 %v576_v0, %v496_v59 }
  0x1d   : > { %459 = vst.msk [vmem:[%s605_s6 + $0xb] sm:$0x1f] %vm296_vm3, %v292_v49  ;;  %v358_v5 = vrot.slane %v356_v61, 1  ;;  %v252_v6 = vmul.f32 %v576_v0, %v497_v62  ;;  %v253_v7 = vmul.f32 %v576_v0, %v500_v63  ;;  %v369_v8 = vunpack.c.h.bf16 %v472_v50 }
  0x1e   : > { %461 = vst.msk [vmem:[%s605_s6 + $0x9] sm:$0x80] %vm309_vm4, %v306_v52  ;;  %v335_v9 = vadd.f32 %v332_v35, %v265_v2  ;;  %v347_v10 = vadd.f32 %v345_v3, %v265_v2  ;;  %v266_v12 = vadd.f32 %v586_v11, %v251_v4  ;;  %v501_v13 = vunpack.c.h.bf16 %v506_v51 }
  0x1f   : > { %462 = vst.msk [vmem:[%s605_s6 + $0x11] sm:$0x7f] %vm311_vm5, %v307_v53  ;;  %v267_v14 = vadd.f32 %v586_v11, %v252_v6  ;;  %v268_v15 = vadd.f32 %v586_v11, %v253_v7  ;;  %v371_v16 = vrot.slane %v369_v8, 7 }
  0x20   : > { %464 = vst.msk [vmem:[%s605_s6 + $0x17] sm:$0xfe] %vm324_vm6, %v321_v54  ;;  %v337_v17 = vmax.f32 %v335_v9, 0.0  ;;  %v349_v18 = vmax.f32 %v347_v10, 0.0  ;;  %v348_v19 = vadd.f32 %v345_v3, %v266_v12  ;;  %v360_v20 = vadd.f32 %v358_v5, %v266_v12 }
  0x21   : > { %465 = vst.msk [vmem:[%s605_s6 + $0x1f] sm:$0x1] %vm326_vm7, %v322_v60  ;;  %v361_v21 = vadd.f32 %v358_v5, %v267_v14  ;;  %v373_v22 = vadd.f32 %v371_v16, %v268_v15  ;;  %v254_v23 = vmul.f32 %v576_v0, %v501_v13 }
  0x22   : > { %467 = vst.msk [vmem:[%s605_s6 + $0x1d] sm:$0xf8] %vm279_vm0, %v336_v1  ;;  %v350_v24 = vmax.f32 %v348_v19, 0.0  ;;  %v362_v25 = vmax.f32 %v360_v20, 0.0 }
  0x23   : > { %468 = vst.msk [vmem:[%s605_s6 + $0x25] sm:$0x7] %vm281_vm1, %v337_v17  ;;  %v363_v26 = vmax.f32 %v361_v21, 0.0  ;;  %v269_v27 = vadd.f32 %v586_v11, %v254_v23  ;;  %v375_v28 = vmax.f32 %v373_v22, 0.0 }
  0x24   : > { %470 = vst.msk [vmem:[%s605_s6 + $0x23] sm:$0xe0] %vm294_vm2, %v349_v18 }
  0x25   : > { %471 = vst.msk [vmem:[%s605_s6 + $0x2b] sm:$0x1f] %vm296_vm3, %v350_v24  ;;  %v374_v29 = vadd.f32 %v371_v16, %v269_v27 }
  0x26   : > { %473 = vst.msk [vmem:[%s605_s6 + $0x29] sm:$0x80] %vm309_vm4, %v362_v25 }
  0x27   : > { %474 = vst.msk [vmem:[%s605_s6 + $0x31] sm:$0x7f] %vm311_vm5, %v363_v26  ;;  %v376_v0 = vmax.f32 %v374_v29, 0.0 }
  0x28   : > { %476 = vst.msk [vmem:[%s605_s6 + $0x37] sm:$0xfe] %vm324_vm6, %v375_v28 }
  0x29   : > { %477 = vst.msk [vmem:[%s605_s6 + $0x3f] sm:$0x1] %vm326_vm7, %v376_v0 }
  0x2a PF: > { %s14_s15 = sadd.s32 1, %s524_s15  }
  0x2b   : > { %p11_p4 = scmp.ge.s32.totalorder %s14_s15, 4  }
  0x2d   :  { %13 = sbr.rel (!%p11_p4) target bundleno = 1 (0x1), region = 83 }

// kernel: basic_block_forward.4
= control target key start
LH: loop header
LB: loop body
LE: loop exit
PB: predicated region body
PF: predicated region fallthrough
CT: control target
= control target key end

     0   :  { %s3146_s21 = smov 0   ;;  %s3904_s0 = inlined_call_operand.vmem [shape: bf16[2,100,128], index: 0, kind: input, shape index: {}]   ;;  %s3905_s1 = inlined_call_operand.vmem [shape: f32[1,128], index: 1, kind: input, shape index: {}]   ;;  %s3906_s2 = inlined_call_operand.vmem [shape: f32[1,128], index: 2, kind: input, shape index: {}]   ;;  %s3907_s3 = inlined_call_operand.vmem [shape: bf16[9,128,128], index: 3, kind: input, shape index: {}]   ;;  %s3908_s4 = inlined_call_operand.vmem [shape: f32[100,1], index: 4, kind: input, shape index: {}]   ;;  %s3909_s5 = inlined_call_operand.vmem [shape: bf16[2,100,128], index: 5, kind: output, shape index: {0}]   ;;  %s3910_s6 = inlined_call_operand.vmem [shape: f32[2,2,128], index: 6, kind: output, shape index: {1}]  }
   0x1 LB: > { %s2384_s22 = sadd.s32 4294967295, %s3108_s21   ;;  %p2388_p0 = scmp.ge.s32.totalorder %s3108_s21, 1  ;;  %s3108_s21 = sphi %s3146_s21, %s17_s21  }
   0x2   : > { %p215_p1 = scmp.lt.s32.totalorder %s3108_s21, 3 }
   0x4   : > { %p216_p2 = pnand %p2388_p0, %p215_p1 }
   0x5   : > { %p249_p3 = scmp.lt.s32.totalorder (!%p216_p2), %s2384_s22, 1 }
   0x6   : > { %219 = sbr.rel (%p216_p2) target bundleno = 569 (0x239), region = 40 }
   0xb   : > { %v313_v0 = vld [vmem:[%s3908_s4 + $0x40] sm:$0xff]  ;;  %v311_v1 = vld [vmem:[%s3908_s4 + $0x30] sm:$0xff]  ;;  %v3110_v2 = vmov 0   ;;  %v314_v4 = vld [vmem:[%s3908_s4 + $0x48] sm:$0xff]  ;;  %s3918_s22 = smov (!%p249_p3, %s2384_s22), 1  ;;  %vm265_vm2 = vcmask 1041408  }
   0xc   : > { %3098 = vset.pattern.permute.xlu1 %v3110_v2  ;;  %264 = vst [vmem:[#allocation2] sm:$0xf] %v3110_v2  ;;  %3097 = vset.pattern.permute.xlu0 %v3110_v2  ;;  %v307_v3 = vld [vmem:[%s3908_s4 + $0x10] sm:$0xff]  ;;  %v312_v5 = vld [vmem:[%s3908_s4 + $0x38] sm:$0xff]  ;;  %v309_v7 = vld [vmem:[%s3908_s4 + $0x20] sm:$0xff]  ;;  %s3087_s27 = smul.u32 52, %s3918_s22 }
   0xd   : > { %277 = vst [vmem:[#allocation2 + $0x38] sm:$0xf] %v3110_v2  ;;  %407 = vperm.xlu1 %3098, %v313_v0   ;;  %397 = vperm.xlu0 %3097, %v311_v1   ;;  %v308_v6 = vld [vmem:[%s3908_s4 + $0x18] sm:$0xff]  ;;  %v315_v8 = vld [vmem:[%s3908_s4 + $0x50] sm:$0xff]  ;;  %v310_v9 = vld [vmem:[%s3908_s4 + $0x28] sm:$0xff]  ;;  %vm271_vm5 = vcmask 1043459  }
   0xe   : > { %278 = vst [vmem:[#allocation2 + $0x3c] sm:$0x1] %v3110_v2  ;;  %3099 = vset.pattern.permute.xlu2 %v3110_v2  ;;  %v306_v10 = vld [vmem:[%s3908_s4 + $0x8] sm:$0xff]  ;;  %v305_v11 = vld [vmem:[%s3908_s4] sm:$0xff]  ;;  %v316_v12 = vld [vmem:[%s3908_s4 + $0x58] sm:$0xff]  ;;  %s3205_s30 = scalar_lea.vmem %s3904_s0, %s3087_s27  ;;  %vm599_vm8 = vcmask 1043457   ;;  %s3863_s11 = scalar_lea.vmem %s3909_s5, %s3087_s27 }
   0xf   : > { %377 = vperm.xlu2 %3099, %v307_v3   ;;  %v317_v13 = vld [vmem:[%s3908_s4 + $0x60] sm:$0xf]  ;;  %v3050_v14 = vld [vmem:[%s3205_s30 + $0x8] sm:$0xff]   ;;  %v2918_v21 = vld [vmem:[%s3907_s3 + $0x78] sm:$0xff]  ;;  %vm266_vm0 = vsmask.f32 1280 }
  0x10   : > { %v2998_v15 = vunpack.c.l.bf16 %v3050_v14  ;;  %v3211_v16 = vld [vmem:[%s3905_s1] ss:$0 sm:$0xff]  ;;  %v2999_v20 = vunpack.c.h.bf16 %v3050_v14  ;;  %3065 = vmatpush.bf16.msra.mxu3 %v2918_v21  ;;  %3064 = vmatpush.bf16.msra.mxu2 %v2918_v21  ;;  %v2917_v24 = vld [vmem:[%s3907_s3 + $0x70] sm:$0xff]  ;;  %v2916_v30 = vld [vmem:[%s3907_s3 + $0x68] sm:$0xff]  ;;  %vm456_vm1 = vsmask.f32 5392 }
  0x11   : > { %v3217_v18 = vld [vmem:[%s3906_s2] ss:$0 sm:$0xff]  ;;  %3063 = vmatpush.bf16.msra.mxu1 %v2918_v21  ;;  %813 = vmatpush.bf16.msra.mxu0 %v2918_v21  ;;  %v3228_v25 = vld [vmem:[%s3205_s30 + $0x10] sm:$0xff]   ;;  %v3052_v33 = vld [vmem:[%s3205_s30 + $0x18] sm:$0xff]   ;;  %vm272_vm6 = vsmask.f32 7950 }
  0x12   : > { %v324_v17 = vmul.f32 %v3211_v16, %v2998_v15  ;;  %v325_v23 = vmul.f32 %v3211_v16, %v2999_v20  ;;  %v3003_v29 = vunpack.c.h.bf16 %v3228_v25  ;;  %v3053_v32 = vld [vmem:[%s3205_s30 + $0x20] sm:$0xff]   ;;  %v3006_v42 = vunpack.c.l.bf16 %v3052_v33  ;;  %v2914_v47 = vld [vmem:[%s3907_s3 + $0x58] sm:$0xff]  ;;  %v3256_v51 = vld [vmem:[%s3205_s30 + $0x28] sm:$0xff]   ;;  %s2391_s27 = sshll.u32 %s3918_s22, 1 }
  0x13   : > { %v2915_v38 = vld [vmem:[%s3907_s3 + $0x60] sm:$0xff]  ;;  %v3010_v39 = vunpack.c.l.bf16 %v3053_v32  ;;  %v3015_v56 = vunpack.c.h.bf16 %v3256_v51  ;;  %v3011_v57 = vunpack.c.h.bf16 %v3053_v32  ;;  %v3007_v58 = vunpack.c.h.bf16 %v3052_v33  ;;  %v2913_v59 = vld [vmem:[%s3907_s3 + $0x50] sm:$0xff]  ;;  %vm267_vm3 = vmand %vm265_vm2, %vm266_vm0  ;;  %s262_s14 = scalar_lea.vmem %s3910_s6, %s2391_s27 }
  0x14   : > { %v341_v19 = vadd.f32 %v3217_v18, %v324_v17  ;;  %3068 = vmatpush.bf16.msra.mxu3 %v2917_v24  ;;  %3067 = vmatpush.bf16.msra.mxu2 %v2917_v24  ;;  %v342_v28 = vadd.f32 %v3217_v18, %v325_v23  ;;  %v327_v37 = vmul.f32 %v3211_v16, %v3003_v29  ;;  %v268_v3 = vld [vmem:[#allocation2 + $0x4] sm:$0x3]  ;;  %vm3273_vm4 = vmor %vm266_vm0, %vm456_vm1  ;;  %v3002_v14 = vunpack.c.l.bf16 %v3228_v25 }
  0x15   : > { %412 = vperm.xlu1 %3098, %v314_v4   ;;  %402 = vperm.xlu0 %3097, %v312_v5   ;;  %v330_v46 = vmul.f32 %v3211_v16, %v3010_v39  ;;  %v328_v50 = vmul.f32 %v3211_v16, %v3006_v42  ;;  %v333_v5 = vmul.f32 %v3211_v16, %v3015_v56  ;;  %v2911_v25 = vld [vmem:[%s3907_s3 + $0x40] sm:$0xff]  ;;  %vm273_vm7 = vmand %vm271_vm5, %vm272_vm6  ;;  %vm600_vm9 = vsmask.f32 7942  ;;  %v2969_v4 = vld [vmem:[%s3907_s3 + $0x1b8] sm:$0xff] }
  0x16   : > { %v354_v22 = vmax.f32 %v341_v19, 0.0  ;;  %3066 = vmatpush.bf16.msra.mxu1 %v2917_v24  ;;  %814 = vmatpush.bf16.msra.mxu0 %v2917_v24  ;;  %v355_v36 = vmax.f32 %v342_v28, 0.0  ;;  %v344_v45 = vadd.f32 %v3217_v18, %v327_v37  ;;  %v3014_v19 = vunpack.c.l.bf16 %v3256_v51  ;;  %v2993_v37 = vld [vmem:[%s3205_s30] sm:$0xff]   ;;  %vm3432_vm10 = vmand %vm599_vm8, %vm600_vm9 }
  0x17   : > { %382 = vperm.xlu2 %3099, %v308_v6   ;;  %v347_v55 = vadd.f32 %v3217_v18, %v330_v46  ;;  %v345_v63 = vadd.f32 %v3217_v18, %v328_v50  ;;  %v331_v6 = vmul.f32 %v3211_v16, %v3011_v57  ;;  %v326_v32 = vmul.f32 %v3211_v16, %v3002_v14  ;;  %v2938_v50 = vld [vmem:[%s3907_s3 + $0xf0] sm:$0xff] }
  0x18   : > { %3071 = vmatpush.bf16.msra.mxu3 %v2916_v30  ;;  %3070 = vmatpush.bf16.msra.mxu2 %v2916_v30  ;;  %v357_v54 = vmax.f32 %v344_v45, 0.0  ;;  %v274_v45 = vld [vmem:[#allocation2 + $0x34] sm:$0x8]  ;;  %vm617_vm11 = vsmask.f32 3328  ;;  %vm616_vm13 = vcmask 1043456  }
  0x19   : > { %v348_v23 = vadd.f32 %v3217_v18, %v331_v6  ;;  %vm702_vm12 = vsmask.f32 7424  ;;  %vm3492_vm14 = vmand %vm616_vm13, %vm617_vm11  ;;  %vm978_vm15 = vcmask 1046528   ;;  %vm1506_vm0 = vcmask 1045504  }
  0x1a   : > { %3069 = vmatpush.bf16.msra.mxu1 %v2916_v30  ;;  %815 = vmatpush.bf16.msra.mxu0 %v2916_v30  ;;  %vm1311_vm1 = vsmask.f32 6400  ;;  %vm1884_vm2 = vsmask.f32 5376 }
  0x1b   : > { %v361_v39 = vmax.f32 %v348_v23, 0.0 }
  0x1c   : > { %3074 = vmatpush.bf16.msra.mxu3 %v2915_v38  ;;  %3073 = vmatpush.bf16.msra.mxu2 %v2915_v38 }
  0x1d   : > { %387 = vperm.xlu1 %3098, %v309_v7   ;;  %417 = vperm.xlu0 %3097, %v315_v8   ;;  %v329_v7 = vmul.f32 %v3211_v16, %v3007_v58  ;;  %v269_v8 = vsel %vm267_vm3, 0, %v268_v3  ;;  %v2937_v3 = vld [vmem:[%s3907_s3 + $0xe8] sm:$0xff]  ;;  %vm2079_vm3 = vcmask 1044480  }
  0x1e   : > { %3072 = vmatpush.bf16.msra.mxu1 %v2915_v38  ;;  %816 = vmatpush.bf16.msra.mxu0 %v2915_v38  ;;  %270 = vst [vmem:[#allocation2 + $0x4] sm:$0x3] %v269_v8 }
  0x1f   : > { %392 = vperm.xlu2 %3099, %v310_v9   ;;  %v2912_v9 = vld [vmem:[%s3907_s3 + $0x48] sm:$0xff]  ;;  %v346_v24 = vadd.f32 %v3217_v18, %v329_v7 }
  0x20   : > { %3077 = vmatpush.bf16.msra.mxu3 %v2914_v47  ;;  %3076 = vmatpush.bf16.msra.mxu2 %v2914_v47 }
  0x22   : > { %3075 = vmatpush.bf16.msra.mxu1 %v2914_v47  ;;  %817 = vmatpush.bf16.msra.mxu0 %v2914_v47  ;;  %v343_v47 = vadd.f32 %v3217_v18, %v326_v32 }
  0x24   : > { %3080 = vmatpush.bf16.msra.mxu3 %v2913_v59  ;;  %3079 = vmatpush.bf16.msra.mxu2 %v2913_v59 }
  0x25   : > { %372 = vperm.xlu1 %3098, %v306_v10   ;;  %367 = vperm.xlu0 %3097, %v305_v11  }
  0x26   : > { %3078 = vmatpush.bf16.msra.mxu1 %v2913_v59  ;;  %818 = vmatpush.bf16.msra.mxu0 %v2913_v59 }
  0x27   : > { %422 = vperm.xlu2 %3099, %v316_v12   ;;  %v360_v12 = vmax.f32 %v347_v55, 0.0  ;;  %v2994_v55 = vunpack.c.l.bf16 %v2993_v37 }
  0x28   : > { %3083 = vmatpush.bf16.msra.mxu3 %v2912_v9  ;;  %3082 = vmatpush.bf16.msra.mxu2 %v2912_v9 }
  0x2a   : > { %3081 = vmatpush.bf16.msra.mxu1 %v2912_v9  ;;  %819 = vmatpush.bf16.msra.mxu0 %v2912_v9 }
  0x2c   : > { %3086 = vmatpush.bf16.msra.mxu3 %v2911_v25  ;;  %3085 = vmatpush.bf16.msra.mxu2 %v2911_v25 }
  0x2d   : > { %427 = vperm.xlu0 %3097, %v317_v13   ;;  %v358_v13 = vmax.f32 %v345_v63, 0.0 }
  0x2e   : > { %3084 = vmatpush.bf16.msra.mxu1 %v2911_v25  ;;  %820 = vmatpush.bf16.msra.mxu0 %v2911_v25 }
  0x69   : > { %v3230_v26 = vpop.permute.xlu2 %377 }
  0x6a   : > { %v432_v27 = vmul.f32 %v3230_v26, %v354_v22  ;;  %v350_v22 = vadd.f32 %v3217_v18, %v333_v5 }
  0x6c   : > { %v445_v31 = vpack.c.bf16 %v432_v27, %v432_v27  ;;  %v363_v38 = vmax.f32 %v350_v22, 0.0 }
  0x6e   : > { %v478_v34 = vshrl.u32 %v445_v31, 16  ;;  %v481_v35 = vshll.u32 %v445_v31, 16  ;;  %v2939_v31 = vld [vmem:[%s3907_s3 + $0xf8] sm:$0xff] }
  0x6f   : > { %1234 = vmatpush.bf16.msrb.mxu3 %v2939_v31 }
  0x70   : > { %v480_v40 = vrot.slane %v478_v34, 6  ;;  %v483_v41 = vrot.slane %v481_v35, 7 }
  0x71   : > { %v3244_v43 = vpop.permute.xlu2 %382 }
  0x72   : > { %v433_v44 = vmul.f32 %v3244_v43, %v355_v36  ;;  %v3252_v48 = vor.u32 %v483_v41, %v480_v40  ;;  %v332_v36 = vmul.f32 %v3211_v16, %v3014_v19 }
  0x73   : > { %1235 = vmatpush.bf16.msrb.mxu3 %v2938_v50  ;;  %v2909_v50 = vld [vmem:[%s3907_s3 + $0x30] sm:$0xff] }
  0x74   : > { %v446_v49 = vpack.c.bf16 %v433_v44, %v433_v44  ;;  %v486_v60 = vrot.slane %v3252_v48, 4  ;;  %v359_v44 = vmax.f32 %v346_v24, 0.0 }
  0x76   : > { %v488_v52 = vshrl.u32 %v446_v49, 16  ;;  %v491_v53 = vshll.u32 %v446_v49, 16  ;;  %v2995_v49 = vunpack.c.h.bf16 %v2993_v37 }
  0x77   : > { %1236 = vmatpush.bf16.msrb.mxu3 %v2937_v3  ;;  %v2947_v3 = vld [vmem:[%s3907_s3 + $0x138] sm:$0xff] }
  0x78   : > { %v490_v61 = vrot.slane %v488_v52, 6  ;;  %v493_v62 = vrot.slane %v491_v53, 7  ;;  %v323_v7 = vmul.f32 %v3211_v16, %v2995_v49  ;;  %v2935_v49 = vld [vmem:[%s3907_s3 + $0xd8] sm:$0xff]  ;;  %1429 = vmatpush.bf16.msrb.mxu0 %v2947_v3 }
  0x79   : > { %v3265_v0 = vpop.permute.xlu2 %392 }
  0x7a   : > { %v3267_v1 = vor.u32 %v493_v62, %v490_v61  ;;  %v435_v2 = vmul.f32 %v3265_v0, %v357_v54  ;;  %v349_v54 = vadd.f32 %v3217_v18, %v332_v36  ;;  %v275_v61 = vsel %vm273_vm7, 0, %v274_v45 }
  0x7b   : > { %276 = vst [vmem:[#allocation2 + $0x34] sm:$0x8] %v275_v61 }
  0x7c   : > { %v495_v10 = vsel %vm3273_vm4, %v486_v60, %v3267_v1  ;;  %v448_v11 = vpack.c.bf16 %v435_v2, %v435_v2  ;;  %v291_v2 = vld [vmem:[%s3205_s30 + $0x30] sm:$0x3] }
  0x7d   : > { %607 = vst [vmem:[#allocation2 + $0x10] sm:$0xf] %v495_v10  ;;  %v356_v10 = vmax.f32 %v343_v47, 0.0 }
  0x7e   : > { %v508_v15 = vshrl.u32 %v448_v11, 16  ;;  %v511_v17 = vshll.u32 %v448_v11, 16  ;;  %v362_v11 = vmax.f32 %v349_v54, 0.0 }
  0x7f   : > { %v3288_v20 = vpop.permute.xlu1 %407  ;;  %v3290_v21 = vpop.permute.xlu0 %397 }
  0x80   : > { %v510_v27 = vrot.slane %v508_v15, 6  ;;  %v513_v28 = vrot.slane %v511_v17, 7  ;;  %v438_v29 = vmul.f32 %v3288_v20, %v360_v12  ;;  %v436_v30 = vmul.f32 %v3290_v21, %v358_v13  ;;  %v2926_v12 = vld [vmem:[%s3907_s3 + $0xb8] sm:$0xff] }
  0x81   : > { %v3313_v53 = vpop.permute.xlu2 %422  ;;  %v322_v15 = vmul.f32 %v3211_v16, %v2994_v55  ;;  %v304_v17 = vunpack.c.l.bf16 %v291_v2  ;;  %1047 = vmatpush.bf16.msrb.mxu2 %v2926_v12  ;;  %v2924_v55 = vld [vmem:[%s3907_s3 + $0xa8] sm:$0xff]  ;;  %v2934_v2 = vld [vmem:[%s3907_s3 + $0xd0] sm:$0xff] }
  0x82   : > { %v3304_v33 = vor.u32 %v513_v28, %v510_v27  ;;  %v451_v34 = vpack.c.bf16 %v438_v29, %v438_v29  ;;  %v449_v35 = vpack.c.bf16 %v436_v30, %v436_v30  ;;  %v441_v6 = vmul.f32 %v3313_v53, %v363_v38  ;;  %v2936_v28 = vld [vmem:[%s3907_s3 + $0xe0] sm:$0xff]  ;;  %v2910_v29 = vld [vmem:[%s3907_s3 + $0x38] sm:$0xff]  ;;  %v2925_v30 = vld [vmem:[%s3907_s3 + $0xb0] sm:$0xff] }
  0x83   : > { %v3336_v27 = vadd.f32 %v3217_v18, %v323_v7  ;;  %1237 = vmatpush.bf16.msrb.mxu3 %v2936_v28  ;;  %914 = vmatpush.bf16.msrb.mxu1 %v2910_v29  ;;  %v2946_v12 = vld [vmem:[%s3907_s3 + $0x130] sm:$0xff] }
  0x84   : > { %v538_v40 = vshrl.u32 %v451_v34, 16  ;;  %v541_v41 = vshll.u32 %v451_v34, 16  ;;  %v518_v42 = vshrl.u32 %v449_v35, 16  ;;  %v521_v46 = vshll.u32 %v449_v35, 16  ;;  %1430 = vmatpush.bf16.msrb.mxu0 %v2946_v12  ;;  %v2920_v12 = vld [vmem:[%s3907_s3 + $0x88] sm:$0xff] }
  0x85   : > { %v516_v51 = vrot.slane %v3304_v33, 4  ;;  %v454_v25 = vpack.c.bf16 %v441_v6, %v441_v6  ;;  %1048 = vmatpush.bf16.msrb.mxu2 %v2925_v30 }
  0x86   : > { %v520_v52 = vrot.slane %v518_v42, 6  ;;  %v540_v56 = vrot.slane %v538_v40, 6  ;;  %v543_v57 = vrot.slane %v541_v41, 7  ;;  %v523_v58 = vrot.slane %v521_v46, 7 }
  0x87   : > { %v3317_v59 = vpop.permute.xlu1 %412  ;;  %v3319_v60 = vpop.permute.xlu0 %402  ;;  %v339_v40 = vadd.f32 %v3217_v18, %v322_v15  ;;  %v334_v41 = vmul.f32 %v3211_v16, %v304_v17  ;;  %v568_v47 = vshrl.u32 %v454_v25, 16  ;;  %v571_v16 = vshll.u32 %v454_v25, 16  ;;  %1238 = vmatpush.bf16.msrb.mxu3 %v2935_v49  ;;  %915 = vmatpush.bf16.msrb.mxu1 %v2909_v50 }
  0x88   : > { %v439_v62 = vmul.f32 %v3317_v59, %v361_v39  ;;  %v437_v63 = vmul.f32 %v3319_v60, %v359_v44  ;;  %v524_v5 = vor.u32 %v523_v58, %v520_v52  ;;  %v544_v13 = vor.u32 %v543_v57, %v540_v56 }
  0x89   : > { %v353_v58 = vmax.f32 %v3336_v27, 0.0  ;;  %1049 = vmatpush.bf16.msrb.mxu2 %v2924_v55  ;;  %v496_v25 = vrot.slane %v3267_v1, 4 }
  0x8a   : > { %v452_v8 = vpack.c.bf16 %v439_v62, %v439_v62  ;;  %v450_v9 = vpack.c.bf16 %v437_v63, %v437_v63  ;;  %v525_v14 = vsel %vm3273_vm4, %v516_v51, %v524_v5  ;;  %v546_v36 = vrot.slane %v544_v13, 4 }
  0x8b   : > { %610 = vst [vmem:[#allocation2 + $0x1c] sm:$0xf] %v525_v14  ;;  %v526_v37 = vrot.slane %v524_v5, 4  ;;  %v352_v62 = vmax.f32 %v339_v40, 0.0  ;;  %v3375_v63 = vadd.f32 %v3217_v18, %v334_v41  ;;  %v2908_v5 = vld [vmem:[%s3907_s3 + $0x28] sm:$0xff]  ;;  %v570_v18 = vrot.slane %v568_v47, 6  ;;  %1239 = vmatpush.bf16.msrb.mxu3 %v2934_v2 }
  0x8c   : > { %v548_v19 = vshrl.u32 %v452_v8, 16  ;;  %v551_v22 = vshll.u32 %v452_v8, 16  ;;  %v528_v23 = vshrl.u32 %v450_v9, 16  ;;  %v531_v24 = vshll.u32 %v450_v9, 16  ;;  %916 = vmatpush.bf16.msrb.mxu1 %v2908_v5  ;;  %v2921_v2 = vld [vmem:[%s3907_s3 + $0x90] sm:$0xff] }
  0x8d   : > { %v364_v29 = vmax.f32 %v3375_v63, 0.0  ;;  %v2906_v63 = vld [vmem:[%s3907_s3 + $0x18] sm:$0xff] }
  0x8e   : > { %v550_v31 = vrot.slane %v548_v19, 6  ;;  %v553_v32 = vrot.slane %v551_v22, 7  ;;  %v530_v34 = vrot.slane %v528_v23, 6  ;;  %v533_v35 = vrot.slane %v531_v24, 7  ;;  %v2933_v23 = vld [vmem:[%s3907_s3 + $0xc8] sm:$0xff]  ;;  %v2907_v24 = vld [vmem:[%s3907_s3 + $0x20] sm:$0xff] }
  0x8f   : > { %v3347_v38 = vpop.permute.xlu1 %387  ;;  %v3349_v39 = vpop.permute.xlu0 %417  ;;  %1240 = vmatpush.bf16.msrb.mxu3 %v2933_v23 }
  0x90   : > { %v3353_v42 = vor.u32 %v553_v32, %v550_v31  ;;  %v534_v44 = vor.u32 %v533_v35, %v530_v34  ;;  %v434_v45 = vmul.f32 %v3347_v38, %v356_v10  ;;  %v440_v46 = vmul.f32 %v3349_v39, %v362_v11  ;;  %v2923_v11 = vld [vmem:[%s3907_s3 + $0xa0] sm:$0xff]  ;;  %917 = vmatpush.bf16.msrb.mxu1 %v2907_v24 }
  0x91   : > { %v573_v10 = vrot.slane %v571_v16, 7  ;;  %1050 = vmatpush.bf16.msrb.mxu2 %v2923_v11  ;;  %v602_v16 = vld [vmem:[#allocation2 + $0x4] sm:$0xe] }
  0x92   : > { %v555_v51 = vsel %vm3273_vm4, %v546_v36, %v3353_v42  ;;  %v535_v52 = vsel %vm3273_vm4, %v526_v37, %v534_v44  ;;  %v536_v54 = vrot.slane %v534_v44, 4  ;;  %v447_v56 = vpack.c.bf16 %v434_v45, %v434_v45 }
  0x93   : > { %613 = vst [vmem:[#allocation2 + $0x28] sm:$0xf] %v555_v51  ;;  %v453_v57 = vpack.c.bf16 %v440_v46, %v440_v46  ;;  %v556_v30 = vrot.slane %v3353_v42, 4  ;;  %v3407_v34 = vor.u32 %v573_v10, %v570_v18  ;;  %v2922_v42 = vld [vmem:[%s3907_s3 + $0x98] sm:$0xff] }
  0x94   : > { %v545_v61 = vsel %vm3273_vm4, %v536_v54, %v544_v13  ;;  %611 = vst [vmem:[#allocation2 + $0x20] sm:$0xf] %v535_v52  ;;  %v498_v6 = vshrl.u32 %v447_v56, 16  ;;  %v501_v7 = vshll.u32 %v447_v56, 16  ;;  %v2932_v52 = vld [vmem:[%s3907_s3 + $0xc0] sm:$0xff]  ;;  %v2945_v54 = vld [vmem:[%s3907_s3 + $0x128] sm:$0xff]  ;;  %918 = vmatpush.bf16.msrb.mxu1 %v2906_v63 }
  0x95   : > { %612 = vst [vmem:[#allocation2 + $0x24] sm:$0xf] %v545_v61  ;;  %v558_v8 = vshrl.u32 %v453_v57, 16  ;;  %v561_v9 = vshll.u32 %v453_v57, 16  ;;  %1051 = vmatpush.bf16.msrb.mxu2 %v2922_v42  ;;  %1241 = vmatpush.bf16.msrb.mxu3 %v2932_v52  ;;  %v2942_v42 = vld [vmem:[%s3907_s3 + $0x110] sm:$0xff] }
  0x96   : > { %v500_v13 = vrot.slane %v498_v6, 6  ;;  %v503_v14 = vrot.slane %v501_v7, 7  ;;  %1431 = vmatpush.bf16.msrb.mxu0 %v2945_v54  ;;  %v2944_v7 = vld [vmem:[%s3907_s3 + $0x120] sm:$0xff] }
  0x97   : > { %v560_v15 = vrot.slane %v558_v8, 6  ;;  %v563_v17 = vrot.slane %v561_v9, 7  ;;  %v3392_v19 = vpop.permute.xlu1 %372  ;;  %v3394_v22 = vpop.permute.xlu0 %367  ;;  %v2905_v8 = vld [vmem:[%s3907_s3 + $0x10] sm:$0xff]  ;;  %v2903_v54 = vld [vmem:[%s3907_s3] sm:$0xff] }
  0x98   : > { %v431_v27 = vmul.f32 %v3392_v19, %v353_v58  ;;  %v430_v28 = vmul.f32 %v3394_v22, %v352_v62  ;;  %v504_v31 = vor.u32 %v503_v14, %v500_v13  ;;  %v576_v13 = vrot.slane %v3407_v34, 4  ;;  %919 = vmatpush.bf16.msrb.mxu1 %v2905_v8 }
  0x99   : > { %v564_v32 = vor.u32 %v563_v17, %v560_v15  ;;  %1052 = vmatpush.bf16.msrb.mxu2 %v2921_v2 }
  0x9a   : > { %v444_v35 = vpack.c.bf16 %v431_v27, %v431_v27  ;;  %v443_v36 = vpack.c.bf16 %v430_v28, %v430_v28  ;;  %v505_v1 = vsel %vm3273_vm4, %v496_v25, %v504_v31  ;;  %v506_v37 = vrot.slane %v504_v31, 4  ;;  %1432 = vmatpush.bf16.msrb.mxu0 %v2944_v7  ;;  %v2943_v28 = vld [vmem:[%s3907_s3 + $0x118] sm:$0xff]  ;;  %v2919_v31 = vld [vmem:[%s3907_s3 + $0x80] sm:$0xff] }
  0x9b   : > { %v565_v40 = vsel %vm3273_vm4, %v556_v30, %v564_v32  ;;  %v566_v41 = vrot.slane %v564_v32, 4  ;;  %608 = vst [vmem:[#allocation2 + $0x14] sm:$0xf] %v505_v1 }
  0x9c   : > { %v468_v44 = vshrl.u32 %v444_v35, 16  ;;  %v471_v45 = vshll.u32 %v444_v35, 16  ;;  %v459_v46 = vshrl.u32 %v443_v36, 16  ;;  %v462_v47 = vshll.u32 %v443_v36, 16  ;;  %614 = vst [vmem:[#allocation2 + $0x2c] sm:$0xf] %v565_v40 }
  0x9d   : > { %v515_v49 = vsel %vm3273_vm4, %v506_v37, %v3304_v33  ;;  %v575_v50 = vsel %vm3273_vm4, %v566_v41, %v3407_v34  ;;  %v3422_v51 = vld [vmem:[#allocation2 + $0x20] sm:$0xff]  ;;  %1053 = vmatpush.bf16.msrb.mxu2 %v2920_v12  ;;  %v2983_v12 = vld [vmem:[%s3907_s3 + $0x1f8] sm:$0xff] }
  0x9e   : > { %609 = vst [vmem:[#allocation2 + $0x18] sm:$0xf] %v515_v49  ;;  %v470_v55 = vrot.slane %v468_v44, 6  ;;  %v473_v33 = vrot.slane %v471_v45, 7  ;;  %v461_v56 = vrot.slane %v459_v46, 6  ;;  %v464_v57 = vrot.slane %v462_v47, 7  ;;  %1433 = vmatpush.bf16.msrb.mxu0 %v2943_v28 }
  0x9f   : > { %615 = vst [vmem:[#allocation2 + $0x30] sm:$0xf] %v575_v50  ;;  %v3436_v61 = vpop.permute.xlu0 %427  ;;  %v735_v62 = vshll.u32 %v3422_v51, 16  ;;  %v739_v35 = vshrl.u32 %v3422_v51, 16  ;;  %v619_v45 = vld [vmem:[#allocation2 + $0x34] sm:$0xf] }
  0xa0   : > { %v474_v3 = vor.u32 %v473_v33, %v470_v55  ;;  %v465_v5 = vor.u32 %v464_v57, %v461_v56  ;;  %v442_v6 = vmul.f32 %v3436_v61, %v364_v29 }
  0xa1   : > { %v3458_v14 = vrot.slane %v735_v62, 1  ;;  %1054 = vmatpush.bf16.msrb.mxu2 %v2919_v31 }
  0xa2   : > { %v476_v9 = vrot.slane %v474_v3, 4  ;;  %v466_v18 = vrot.slane %v465_v5, 4  ;;  %v603_v10 = vsel %vm3432_vm10, %v465_v5, %v602_v16  ;;  %v455_v11 = vpack.c.bf16 %v442_v6, %v442_v6  ;;  %v3460_v15 = vld [vmem:[#allocation2 + $0x10] sm:$0xff]  ;;  %1434 = vmatpush.bf16.msrb.mxu0 %v2942_v42 }
  0xa3   : > { %604 = vst [vmem:[#allocation2 + $0x4] sm:$0xe] %v603_v10  ;;  %v3467_v27 = vld [vmem:[#allocation2 + $0x28] sm:$0xff]  ;;  %v719_v30 = vshll.u32 %v3460_v15, 16  ;;  %v723_v37 = vshrl.u32 %v3460_v15, 16  ;;  %v741_v47 = vor.u32 %v739_v35, %v3458_v14 }
  0xa4   : > { %v485_v17 = vsel %vm3273_vm4, %v476_v9, %v3252_v48  ;;  %v475_v23 = vsel %vm3273_vm4, %v466_v18, %v474_v3  ;;  %v578_v24 = vshrl.u32 %v455_v11, 16  ;;  %v581_v25 = vshll.u32 %v455_v11, 16  ;;  %v2904_v48 = vld [vmem:[%s3907_s3 + $0x8] sm:$0xff]  ;;  %v2955_v18 = vld [vmem:[%s3907_s3 + $0x178] sm:$0xff] }
  0xa5   : > { %606 = vst [vmem:[#allocation2 + $0xc] sm:$0xf] %v485_v17  ;;  %v3472_v29 = vld [vmem:[#allocation2 + $0x18] sm:$0xff]  ;;  %v743_v36 = vshll.u32 %v3467_v27, 16  ;;  %v3483_v1 = vrot.slane %v719_v30, 1  ;;  %920 = vmatpush.bf16.msrb.mxu1 %v2904_v48  ;;  %v2941_v3 = vld [vmem:[%s3907_s3 + $0x108] sm:$0xff] }
  0xa6   : > { %605 = vst [vmem:[#allocation2 + $0x8] sm:$0xf] %v475_v23  ;;  %v580_v32 = vrot.slane %v578_v24, 6  ;;  %v583_v34 = vrot.slane %v581_v25, 7  ;;  %v727_v40 = vshll.u32 %v3472_v29, 16  ;;  %1435 = vmatpush.bf16.msrb.mxu0 %v2941_v3  ;;  %v2940_v24 = vld [vmem:[%s3907_s3 + $0x100] sm:$0xff] }
  0xa7   : > { %v651_v41 = vld [vmem:[#allocation2 + $0x30] sm:$0x7]  ;;  %v745_v49 = vrot.slane %v743_v36, 1  ;;  %v725_v16 = vor.u32 %v723_v37, %v3483_v1  ;;  %v2991_v30 = vld [vmem:[%s3907_s3 + $0x238] sm:$0xff]  ;;  %v731_v31 = vshrl.u32 %v3472_v29, 16  ;;  %v988_v42 = vrot.slane %v3467_v27, 1 }
  0xa8   : > { %v584_v46 = vor.u32 %v583_v34, %v580_v32  ;;  %v694_v50 = vunpack.c.l.b16 %v651_v41  ;;  %v729_v52 = vrot.slane %v727_v40, 1  ;;  %v2968_v48 = vld [vmem:[%s3907_s3 + $0x1b0] sm:$0xff]  ;;  %v747_v34 = vshrl.u32 %v3467_v27, 16 }
  0xa9   : > { %v746_v33 = vsel %vm702_vm12, %v741_v47, %v745_v49  ;;  %921 = vmatpush.bf16.msrb.mxu1 %v2903_v54  ;;  %v2982_v47 = vld [vmem:[%s3907_s3 + $0x1f0] sm:$0xff] }
  0xaa   : > { %v585_v55 = vsel %vm3273_vm4, %v576_v13, %v584_v46  ;;  %v3504_v56 = vpack.c.b16 %v694_v50, %v694_v50  ;;  %v3506_v57 = vld [vmem:[#allocation2] sm:$0xff]   ;;  %841 = vmatmul.bf16.vlgmr.msra.gmra.mxu2 %v746_v33  ;;  %v730_v62 = vsel %vm702_vm12, %v725_v16, %v729_v52  ;;  %1436 = vmatpush.bf16.msrb.mxu0 %v2940_v24  ;;  %vm2295_vm4 = vcmask 1040384  }
  0xab   : > { %v620_v58 = vsel %vm3492_vm14, %v585_v55, %v619_v45  ;;  %v706_v63 = vshll.u32 %v3506_v57, 16  ;;  %831 = vmatmul.bf16.vlgmr.msra.gmra.mxu1 %v730_v62  ;;  %v704_v6 = vshrl.u32 %v3506_v57, 16  ;;  %1762 = vmatpush.bf16.msra.mxu2 %v2969_v4  ;;  %v1103_v28 = vld [vmem:[#allocation2 + $0x4] sm:$0xe]  ;;  %v733_v35 = vor.u32 %v731_v31, %v729_v52 }
  0xac   : > { %621 = vst [vmem:[#allocation2 + $0x34] sm:$0xf] %v620_v58  ;;  %v751_v2 = vshll.u32 %v3504_v56, 16  ;;  %v755_v9 = vshrl.u32 %v3504_v56, 16  ;;  %v1146_v36 = vunpack.c.l.b16 %v1103_v28  ;;  %v749_v37 = vor.u32 %v747_v34, %v745_v49  ;;  %v3550_v46 = vld [vmem:[#allocation2 + $0xc] sm:$0xff]  ;;  %v3595_v34 = vld [vmem:[#allocation2 + $0x24] sm:$0xff] }
  0xad   : > { %v3519_v5 = vld [vmem:[#allocation2 + $0x8] sm:$0xff]  ;;  %v708_v7 = vrot.slane %v706_v63, 1  ;;  %1575 = vmatpush.bf16.msra.mxu1 %v2955_v18  ;;  %v990_v44 = vrot.slane %v3504_v56, 1  ;;  %v738_v45 = vsel %vm702_vm12, %v733_v35, %v3458_v14  ;;  %v2954_v49 = vld [vmem:[%s3907_s3 + $0x170] sm:$0xff]  ;;  %v1485_v52 = vld [vmem:[#allocation2 + $0x4] sm:$0xc] }
  0xae   : > { %v753_v8 = vrot.slane %v751_v2, 1  ;;  %v711_v11 = vshll.u32 %v3519_v5, 16  ;;  %v3530_v23 = vld [vmem:[#allocation2 + $0x8] sm:$0xff]   ;;  %v715_v16 = vshrl.u32 %v3519_v5, 16  ;;  %v1167_v54 = vrot.slane %v3550_v46, 1  ;;  %v2990_v2 = vld [vmem:[%s3907_s3 + $0x230] sm:$0xff] }
  0xaf   : > { %v709_v10 = vor.u32 %v708_v7, %v704_v6  ;;  %v1147_v32 = vunpack.c.l.b16 %v3530_v23  ;;  %1763 = vmatpush.bf16.msra.mxu2 %v2968_v48  ;;  %v3563_v50 = vsel %vm978_vm15, %v988_v42, %v990_v44  ;;  %v3055_v33 = vld [vmem:[#allocation2] sm:$0xf0]  ;;  %v3056_v58 = vld [vmem:[#allocation2] sm:$0xe]  ;;  %v1504_v63 = vunpack.c.l.b16 %v1485_v52  ;;  %v3573_v6 = vld [vmem:[#allocation2 + $0x14] sm:$0xff] }
  0xb0   : > { %v757_v13 = vor.u32 %v755_v9, %v753_v8  ;;  %v713_v17 = vrot.slane %v711_v11, 1  ;;  %v754_v41 = vsel %vm702_vm12, %v749_v37, %v753_v8  ;;  %v3057_v4 = vor.u32 %v3056_v58, %v3055_v33  ;;  %v2967_v8 = vld [vmem:[%s3907_s3 + $0x1a8] sm:$0xff] }
  0xb1   : > { %v1159_v40 = vpack.c.b16 %v1147_v32, %v1146_v36  ;;  %1576 = vmatpush.bf16.msra.mxu1 %v2954_v49  ;;  %v1505_v7 = vpack.c.b16 %v1147_v32, %v1504_v63  ;;  %v2981_v9 = vld [vmem:[%s3907_s3 + $0x1e8] sm:$0xff]  ;;  %v1321_v28 = vshrl.u32 %v3550_v46, 16 }
  0xb2   : > { %851 = vmatmul.bf16.vlgmr.msra.gmra.mxu3 %v757_v13  ;;  %v714_v25 = vsel %vm702_vm12, %v709_v10, %v713_v17  ;;  %v717_v55 = vor.u32 %v715_v16, %v713_v17  ;;  %v1508_v10 = vrot.slane %v3550_v46, 2  ;;  %v979_v11 = vrot.slane %v3057_v4, 1  ;;  %v3583_v17 = vld [vmem:[#allocation2 + $0x1c] sm:$0xff]  ;;  %v2953_v37 = vld [vmem:[%s3907_s3 + $0x168] sm:$0xff] }
  0xb3   : > { %2002 = vmatpush.bf16.msra.mxu3 %v2983_v12  ;;  %821 = vmatmul.bf16.vlgmr.msra.gmra.mxu0 %v714_v25  ;;  %v1166_v14 = vrot.slane %v1159_v40, 1  ;;  %v1507_v18 = vrot.slane %v1505_v7, 2  ;;  %v980_v12 = vrot.slane %v3519_v5, 1  ;;  %v1316_v13 = vshll.u32 %v1159_v40, 16  ;;  %v1290_v48 = vld [vmem:[#allocation2 + $0x34] sm:$0xff]   ;;  %v2989_v63 = vld [vmem:[%s3907_s3 + $0x228] sm:$0xff] }
  0xb4   : > { %2148 = vmatpush.bf16.msra.mxu0 %v2991_v30  ;;  %v722_v3 = vsel %vm702_vm12, %v717_v55, %v3483_v1  ;;  %1764 = vmatpush.bf16.msra.mxu2 %v2967_v8  ;;  %v1313_v1 = vshrl.u32 %v1159_v40, 16  ;;  %v1510_v25 = vrot.slane %v3573_v6, 2  ;;  %v1324_v30 = vshll.u32 %v3550_v46, 16  ;;  %v3619_v4 = vld [vmem:[#allocation2 + $0x30] sm:$0xff]  ;;  %v2980_v8 = vld [vmem:[%s3907_s3 + $0x1e0] sm:$0xff] }
  0xb5   : > { %v1168_v62 = vsel %vm978_vm15, %v1166_v14, %v1167_v54  ;;  %v3586_v24 = vsel %vm1506_vm0, %v1507_v18, %v1508_v10  ;;  %v981_v32 = vsel %vm978_vm15, %v979_v11, %v980_v12  ;;  %v1318_v36 = vrot.slane %v1316_v13, 2  ;;  %1577 = vmatpush.bf16.msra.mxu1 %v2953_v37 }
  0xb6   : > { %v3592_v31 = vsel %vm1506_vm0, %v1508_v10, %v1510_v25  ;;  %v1315_v35 = vrot.slane %v1313_v1, 1  ;;  %v1512_v40 = vrot.slane %v3583_v17, 2  ;;  %v1326_v46 = vrot.slane %v1324_v30, 2 }
  0xb7   : > { %2003 = vmatpush.bf16.msra.mxu3 %v2982_v47  ;;  %v3602_v47 = vld [vmem:[#allocation2 + $0x2c] sm:$0xff]  ;;  %v1514_v14 = vrot.slane %v3595_v34, 2  ;;  %v1169_v16 = vrot.slane %v3573_v6, 1  ;;  %v1703_v11 = vrot.slane %v3619_v4, 2  ;;  %v1330_v30 = vshrl.u32 %v3573_v6, 16 }
  0xb8   : > { %2149 = vmatpush.bf16.msra.mxu0 %v2990_v2  ;;  %v3605_v49 = vsel %vm1506_vm0, %v1510_v25, %v1512_v40  ;;  %v1319_v52 = vor.u32 %v1318_v36, %v1315_v35  ;;  %v1686_v2 = vunpack.c.h.b16 %v1290_v48  ;;  %v982_v25 = vrot.slane %v3460_v15, 1  ;;  %v2988_v35 = vld [vmem:[%s3907_s3 + $0x220] sm:$0xff] }
  0xb9   : > { %v3612_v33 = vsel %vm1506_vm0, %v1512_v40, %v1514_v14  ;;  %v1332_v36 = vrot.slane %v1330_v30, 1  ;;  %v1171_v40 = vrot.slane %v3583_v17, 1  ;;  %v1351_v30 = vshll.u32 %v3595_v34, 16 }
  0xba   : > { %846 = vmatmul.bf16.gmra.mxu2 %v754_v41  ;;  %v1309_v41 = vunpack.c.l.b16 %v1290_v48  ;;  %v3634_v18 = vpack.c.b16 %v1686_v2, %v1686_v2  ;;  %v1333_v48 = vshll.u32 %v3573_v6, 16  ;;  %v2965_v6 = vld [vmem:[%s3907_s3 + $0x198] sm:$0xff] }
  0xbb   : > { %836 = vmatmul.bf16.gmra.mxu1 %v738_v45  ;;  %2004 = vmatpush.bf16.msra.mxu3 %v2981_v9  ;;  %v1323_v45 = vrot.slane %v1321_v28, 1  ;;  %v2952_v9 = vld [vmem:[%s3907_s3 + $0x160] sm:$0xff] }
  0xbc   : > { %v3609_v55 = vpack.c.b16 %v1309_v41, %v1309_v41  ;;  %2150 = vmatpush.bf16.msra.mxu0 %v2989_v63  ;;  %v1705_v1 = vrot.slane %v3634_v18, 2  ;;  %1578 = vmatpush.bf16.msra.mxu1 %v2952_v9  ;;  %v1335_v37 = vrot.slane %v1333_v48, 2  ;;  %v1172_v41 = vsel %vm978_vm15, %v1169_v16, %v1171_v40  ;;  %v2950_v9 = vld [vmem:[%s3907_s3 + $0x150] sm:$0xff] }
  0xbd   : > { %v1327_v58 = vor.u32 %v1326_v46, %v1323_v45  ;;  %v2951_v46 = vld [vmem:[%s3907_s3 + $0x158] sm:$0xff]  ;;  %v986_v48 = vrot.slane %v3422_v51, 1 }
  0xbe   : > { %v1518_v10 = vrot.slane %v3609_v55, 2  ;;  %v3650_v28 = vsel %vm1506_vm0, %v1703_v11, %v1705_v1  ;;  %v1336_v45 = vor.u32 %v1335_v37, %v1332_v36  ;;  %v1353_v36 = vrot.slane %v1351_v30, 2  ;;  %v2986_v37 = vld [vmem:[%s3907_s3 + $0x210] sm:$0xff] }
  0xbf   : > { %2005 = vmatpush.bf16.msra.mxu3 %v2980_v8 }
  0xc0   : > { %2151 = vmatpush.bf16.msra.mxu0 %v2988_v35  ;;  %1579 = vmatpush.bf16.msra.mxu1 %v2951_v46  ;;  %v2985_v46 = vld [vmem:[%s3907_s3 + $0x208] sm:$0xff] }
  0xc2   : > { %1242 = vmatmul.bf16.vlgmr.msrb.gmra.mxu3 %v1168_v62  ;;  %v1516_v62 = vrot.slane %v3602_v47, 2 }
  0xc3   : > { %826 = vmatmul.bf16.gmra.mxu0 %v722_v3  ;;  %v1328_v3 = vsel %vm1311_vm1, %v1319_v52, %v1327_v58  ;;  %v1342_v52 = vshll.u32 %v3583_v17, 16 }
  0xc4   : > { %v3623_v7 = vsel %vm1506_vm0, %v1514_v14, %v1516_v62  ;;  %v3642_v13 = vsel %vm1506_vm0, %v1516_v62, %v1518_v10  ;;  %v984_v14 = vrot.slane %v3472_v29, 1  ;;  %v1173_v62 = vrot.slane %v3595_v34, 1  ;;  %1580 = vmatpush.bf16.msra.mxu1 %v2950_v9 }
  0xc5   : > { %v1344_v2 = vrot.slane %v1342_v52, 2  ;;  %v1360_v52 = vshll.u32 %v3602_v47, 16  ;;  %v1369_v9 = vshll.u32 %v3609_v55, 16 }
  0xca   : > { %1055 = vmatmul.bf16.vlgmr.msrb.gmra.mxu2 %v981_v32  ;;  %v983_v32 = vsel %vm978_vm15, %v980_v12, %v982_v25  ;;  %v1337_v12 = vsel %vm1311_vm1, %v1327_v58, %v1336_v45  ;;  %v2987_v58 = vld [vmem:[%s3907_s3 + $0x218] sm:$0xff] }
  0xcb   : > { %922 = vmatmul.bf16.vlgmr.msrb.gmra.mxu1 %v3506_v57  ;;  %v1170_v57 = vsel %vm978_vm15, %v1167_v54, %v1169_v16  ;;  %v2966_v54 = vld [vmem:[%s3907_s3 + $0x1a0] sm:$0xff]  ;;  %v1339_v16 = vshrl.u32 %v3583_v17, 16  ;;  %2152 = vmatpush.bf16.msra.mxu0 %v2987_v58  ;;  %v2964_v17 = vld [vmem:[%s3907_s3 + $0x190] sm:$0xff]  ;;  %v989_v58 = vsel %vm978_vm15, %v986_v48, %v988_v42 }
  0xcc   : > { %1765 = vmatpush.bf16.msra.mxu2 %v2966_v54  ;;  %v2948_v42 = vld [vmem:[%s3907_s3 + $0x140] sm:$0xff] }
  0xcd   : > { %v1341_v63 = vrot.slane %v1339_v16, 1  ;;  %v1357_v16 = vshrl.u32 %v3602_v47, 16 }
  0xcf   : > { %v1345_v54 = vor.u32 %v1344_v2, %v1341_v63  ;;  %2153 = vmatpush.bf16.msra.mxu0 %v2986_v37  ;;  %v1362_v63 = vrot.slane %v1360_v52, 2  ;;  %v2962_v2 = vld [vmem:[%s3907_s3 + $0x180] sm:$0xff] }
  0xd0   : > { %1766 = vmatpush.bf16.msra.mxu2 %v2965_v6  ;;  %v1115_v6 = vld [vmem:[#allocation2 + $0x34] sm:$0x7] }
  0xd1   : > { %v1346_v8 = vsel %vm1311_vm1, %v1336_v45, %v1345_v54 }
  0xd2   : > { %1247 = vmatmul.bf16.gmra.mxu3 %v1170_v57  ;;  %v985_v57 = vsel %vm978_vm15, %v982_v25, %v984_v14  ;;  %v1348_v25 = vshrl.u32 %v3595_v34, 16 }
  0xd3   : > { %1437 = vmatmul.bf16.vlgmr.msrb.gmra.mxu0 %v1328_v3  ;;  %v1174_v3 = vsel %vm978_vm15, %v1171_v40, %v1173_v62  ;;  %v2963_v40 = vld [vmem:[%s3907_s3 + $0x188] sm:$0xff] }
  0xd4   : > { %1767 = vmatpush.bf16.msra.mxu2 %v2964_v17  ;;  %v1350_v35 = vrot.slane %v1348_v25, 1  ;;  %2154 = vmatpush.bf16.msra.mxu0 %v2985_v46  ;;  %v1818_v25 = vld [vmem:[#allocation2 + $0x8] sm:$0xc] }
  0xd6   : > { %v1354_v34 = vor.u32 %v1353_v36, %v1350_v35  ;;  %v1864_v35 = vunpack.c.h.b16 %v3530_v23 }
  0xd8   : > { %1768 = vmatpush.bf16.msra.mxu2 %v2963_v40 }
  0xda   : > { %1060 = vmatmul.bf16.gmra.mxu2 %v983_v32  ;;  %v987_v32 = vsel %vm978_vm15, %v984_v14, %v986_v48  ;;  %v1158_v14 = vunpack.c.l.b16 %v1115_v6  ;;  %v1371_v48 = vrot.slane %v1369_v9, 2 }
  0xdb   : > { %927 = vmatmul.bf16.gmra.mxu1 %v3519_v5  ;;  %v2979_v5 = vld [vmem:[%s3907_s3 + $0x1d8] sm:$0xff] }
  0xdc   : > { %2006 = vmatpush.bf16.msra.mxu3 %v2979_v5  ;;  %v1355_v5 = vsel %vm1311_vm1, %v1345_v54, %v1354_v34  ;;  %1769 = vmatpush.bf16.msra.mxu2 %v2962_v2 }
  0xe2   : > { %1252 = vmatmul.bf16.gmra.mxu3 %v1172_v41  ;;  %v1175_v41 = vrot.slane %v3602_v47, 1 }
  0xe3   : > { %1442 = vmatmul.bf16.gmra.mxu0 %v1337_v12  ;;  %v2977_v12 = vld [vmem:[%s3907_s3 + $0x1c8] sm:$0xff] }
  0xe4   : > { %v1176_v45 = vsel %vm978_vm15, %v1173_v62, %v1175_v41  ;;  %v1359_v62 = vrot.slane %v1357_v16, 1 }
  0xe6   : > { %v1363_v47 = vor.u32 %v1362_v63, %v1359_v62  ;;  %v2722_v62 = vld [vmem:[#allocation2 + $0x8] sm:$0xc]  ;;  %v2956_v63 = vld [vmem:[#allocation2 + $0x8] sm:$0xf0] }
  0xe7   : > { %v2723_v56 = vor.u32 %v2956_v63, %v2722_v62 }
  0xe9   : > { %v1694_v9 = vrot.slane %v2723_v56, 2 }
  0xea   : > { %1065 = vmatmul.bf16.gmra.mxu2 %v985_v57  ;;  %v1165_v57 = vpack.c.b16 %v1158_v14, %v1158_v14 }
  0xeb   : > { %932 = vmatmul.bf16.gmra.mxu1 %v3460_v15  ;;  %v2978_v15 = vld [vmem:[%s3907_s3 + $0x1d0] sm:$0xff] }
  0xec   : > { %2007 = vmatpush.bf16.msra.mxu3 %v2978_v15  ;;  %v1177_v54 = vrot.slane %v1165_v57, 1  ;;  %v2984_v15 = vld [vmem:[%s3907_s3 + $0x200] sm:$0xff] }
  0xed   : > { %2155 = vmatpush.bf16.msra.mxu0 %v2984_v15 }
  0xee   : > { %v1178_v17 = vsel %vm978_vm15, %v1175_v41, %v1177_v54  ;;  %v634_v41 = vld [vmem:[#allocation2 + $0x30] sm:$0x3] }
  0xf0   : > { %2008 = vmatpush.bf16.msra.mxu3 %v2977_v12  ;;  %v857_v12 = vunpack.c.l.b16 %v634_v41 }
  0xf2   : > { %1257 = vmatmul.bf16.gmra.mxu3 %v1174_v3  ;;  %v2976_v3 = vld [vmem:[%s3907_s3 + $0x1c0] sm:$0xff]  ;;  %v858_v46 = vpack.c.b16 %v857_v12, %v857_v12 }
  0xf3   : > { %1447 = vmatmul.bf16.gmra.mxu0 %v1346_v8  ;;  %v1366_v8 = vshrl.u32 %v3609_v55, 16 }
  0xf4   : > { %2009 = vmatpush.bf16.msra.mxu3 %v2976_v3 }
  0xf5   : > { %v1368_v30 = vrot.slane %v1366_v8, 1 }
  0xf7   : > { %v1372_v36 = vor.u32 %v1371_v48, %v1368_v30 }
  0xf9   : > { %v1373_v40 = vsel %vm1311_vm1, %v1363_v47, %v1372_v36 }
  0xfa   : > { %1070 = vmatmul.bf16.gmra.mxu2 %v987_v32  ;;  %v1863_v32 = vunpack.c.l.b16 %v1818_v25 }
  0xfb   : > { %937 = vmatmul.bf16.gmra.mxu1 %v3472_v29  ;;  %v2949_v29 = vld [vmem:[%s3907_s3 + $0x148] sm:$0xff] }
  0xfc   : > { %1581 = vmatpush.bf16.msra.mxu1 %v2949_v29  ;;  %v1877_v37 = vpack.c.b16 %v1864_v35, %v1863_v32 }
  0xfe   : > { %v1889_v6 = vshll.u32 %v1877_v37, 16 }
 0x100   : > { %1582 = vmatpush.bf16.msra.mxu1 %v2948_v42  ;;  %v1891_v23 = vrot.slane %v1889_v6, 3 }
 0x102   : > { %1262 = vmatmul.bf16.gmra.mxu3 %v1176_v45  ;;  %v1886_v45 = vshrl.u32 %v1877_v37, 16 }
 0x103   : > { %1452 = vmatmul.bf16.gmra.mxu0 %v1355_v5 }
 0x104   : > { %v1888_v5 = vrot.slane %v1886_v45, 2 }
 0x106   : > { %v1892_v52 = vor.u32 %v1891_v23, %v1888_v5 }
 0x10a   : > { %1075 = vmatmul.bf16.gmra.mxu2 %v989_v58 }
 0x10b   : > { %942 = vmatmul.bf16.gmra.mxu1 %v3422_v51  ;;  %v1364_v51 = vsel %vm1311_vm1, %v1354_v34, %v1363_v47  ;;  %v3740_v34 = vld [vmem:[#allocation2 + $0x10] sm:$0xff]  ;;  %v3753_v47 = vld [vmem:[#allocation2 + $0x18] sm:$0xff] }
 0x10c   : > { %v1897_v29 = vshll.u32 %v3740_v34, 16  ;;  %v1906_v15 = vshll.u32 %v3753_v47, 16 }
 0x10e   : > { %v1899_v16 = vrot.slane %v1897_v29, 3 }
 0x112   : > { %1267 = vmatmul.bf16.gmra.mxu3 %v1178_v17  ;;  %v2058_v17 = vld [vmem:[#allocation2 + $0x8] sm:$0x8] }
 0x113   : > { %1457 = vmatmul.bf16.gmra.mxu0 %v1364_v51  ;;  %v1903_v51 = vshrl.u32 %v3753_v47, 16  ;;  %v2077_v25 = vunpack.c.l.b16 %v2058_v17 }
 0x115   : > { %v1905_v37 = vrot.slane %v1903_v51, 2  ;;  %v2078_v41 = vpack.c.b16 %v1864_v35, %v2077_v25  ;;  %v3772_v35 = vld [vmem:[#allocation2 + $0x20] sm:$0xff] }
 0x116   : > { %v1912_v63 = vshrl.u32 %v3772_v35, 16 }
 0x118   : > { %v1914_v17 = vrot.slane %v1912_v63, 2 }
 0x11a   : > { %1080 = vmatmul.bf16.gmra.mxu2 %v3563_v50  ;;  %v1894_v50 = vshrl.u32 %v3740_v34, 16 }
 0x11b   : > { %947 = vmatmul.bf16.gmra.mxu1 %v3467_v27 }
 0x11c   : > { %v1896_v14 = vrot.slane %v1894_v50, 2  ;;  %v2080_v50 = vrot.slane %v2078_v41, 3 }
 0x11e   : > { %v1900_v58 = vor.u32 %v1899_v16, %v1896_v14  ;;  %v2958_v14 = vld [vmem:[#allocation2 + $0x18] sm:$0xff] }
 0x11f   : > { %v1697_v62 = vrot.slane %v2958_v14, 2 }
 0x120   : > { %v1901_v2 = vsel %vm1884_vm2, %v1892_v52, %v1900_v58 }
 0x122   : > { %1272 = vmatmul.bf16.gmra.mxu3 %v1177_v54 }
 0x123   : > { %1462 = vmatmul.bf16.gmra.mxu0 %v1373_v40  ;;  %v1908_v40 = vrot.slane %v1906_v15, 3 }
 0x125   : > { %v1909_v6 = vor.u32 %v1908_v40, %v1905_v37  ;;  %v2083_v40 = vrot.slane %v3753_v47, 3 }
 0x127   : > { %v1910_v29 = vsel %vm1884_vm2, %v1900_v58, %v1909_v6  ;;  %v1915_v58 = vshll.u32 %v3772_v35, 16 }
 0x128   : > { %v3744_v27 = vpop.f32.mrf.mxu1 }
 0x129   : > { %v1917_v51 = vrot.slane %v1915_v58, 3 }
 0x12a   : > { %1085 = vmatmul.bf16.gmra.mxu2 %v990_v44  ;;  %v2957_v44 = vld [vmem:[#allocation2 + $0x10] sm:$0xff] }
 0x12b   : > { %952 = vmatmul.bf16.gmra.mxu1 %v858_v46  ;;  %v1695_v30 = vrot.slane %v2957_v44, 2  ;;  %v2081_v46 = vrot.slane %v3740_v34, 3  ;;  %v1918_v37 = vor.u32 %v1917_v51, %v1914_v17 }
 0x12d   : > { %v3748_v57 = vpop.f32.mrf.mxu2  ;;  %v2082_v16 = vsel %vm2079_vm3, %v2080_v50, %v2081_v46  ;;  %v1698_v34 = vsel %vm1506_vm0, %v1695_v30, %v1697_v62  ;;  %v2084_v14 = vsel %vm2079_vm3, %v2081_v46, %v2083_v40 }
 0x130   : > { %v822_v3 = vpop.f32.mrf.mxu0  ;;  %v3751_v54 = vpop.f32.mrf.mxu1 }
 0x132   : > { %2010 = vmatmul.bf16.vlgmr.msra.gmra.mxu3 %v1901_v2 }
 0x133   : > { %1467 = vmatmul.bf16.gmra.mxu0 %v1372_v36  ;;  %v1696_v36 = vsel %vm1506_vm0, %v1694_v9, %v1695_v30 }
 0x135   : > { %v3755_v42 = vpop.f32.mrf.mxu3  ;;  %v3759_v8 = vpop.f32.mrf.mxu2 }
 0x138   : > { %v824_v48 = vpop.f32.mrf.mxu0  ;;  %v3761_v32 = vpop.f32.mrf.mxu1 }
 0x13a   : > { %1770 = vmatmul.bf16.vlgmr.msra.gmra.mxu2 %v1696_v36  ;;  %v1919_v36 = vsel %vm1884_vm2, %v1909_v6, %v1918_v37 }
 0x13b   : > { %1583 = vmatmul.bf16.vlgmr.msra.gmra.mxu1 %v3586_v24 }
 0x13d   : > { %v854_v45 = vpop.f32.mrf.mxu3  ;;  %v3765_v12 = vpop.f32.mrf.mxu2 }
 0x140   : > { %v827_v5 = vpop.f32.mrf.mxu0  ;;  %v3768_v23 = vpop.f32.mrf.mxu1 }
 0x142   : > { %2015 = vmatmul.bf16.gmra.mxu3 %v1910_v29  ;;  %v3782_v29 = vld [vmem:[#allocation2 + $0x28] sm:$0xff] }
 0x143   : > { %2156 = vmatmul.bf16.vlgmr.msra.gmra.mxu0 %v2082_v16  ;;  %v1921_v63 = vshrl.u32 %v3782_v29, 16  ;;  %v1924_v47 = vshll.u32 %v3782_v29, 16 }
 0x145   : > { %v1243_v24 = vpop.f32.mrf.mxu3  ;;  %v3774_v52 = vpop.f32.mrf.mxu2  ;;  %v1923_v17 = vrot.slane %v1921_v63, 2  ;;  %v1926_v51 = vrot.slane %v1924_v47, 3  ;;  %v3795_v63 = vld [vmem:[#allocation2 + $0x30] sm:$0xff] }
 0x148   : > { %v829_v2 = vpop.f32.mrf.mxu0  ;;  %v923_v56 = vpop.f32.mrf.mxu1 }
 0x149   : > { %v924_v44 = vadd.f32 %v923_v56, %v822_v3 }
 0x14a   : > { %1775 = vmatmul.bf16.gmra.mxu2 %v1698_v34 }
 0x14b   : > { %1588 = vmatmul.bf16.gmra.mxu1 %v3592_v31  ;;  %v2959_v31 = vld [vmem:[#allocation2 + $0x20] sm:$0xff] }
 0x14c   : > { %v1699_v56 = vrot.slane %v2959_v31, 2  ;;  %v2085_v31 = vrot.slane %v3772_v35, 3 }
 0x14d   : > { %v1245_v15 = vpop.f32.mrf.mxu3  ;;  %v1056_v9 = vpop.f32.mrf.mxu2 }
 0x14e   : > { %v1090_v25 = vadd.f32 %v1056_v9, %v924_v44  ;;  %v1700_v9 = vsel %vm1506_vm0, %v1697_v62, %v1699_v56  ;;  %v2960_v62 = vld [vmem:[#allocation2 + $0x28] sm:$0xff] }
 0x150   : > { %v925_v41 = vpop.f32.mrf.mxu1  ;;  %v1277_v45 = vadd.f32 %v1243_v24, %v1090_v25  ;;  %v1438_v50 = vpop.f32.mrf.mxu0 }
 0x151   : > { %v926_v3 = vadd.f32 %v925_v41, %v824_v48 }
 0x152   : > { %2020 = vmatmul.bf16.gmra.mxu3 %v1919_v36  ;;  %v3784_v30 = vadd.f32 %v1438_v50, %v1277_v45  ;;  %v1927_v36 = vor.u32 %v1926_v51, %v1923_v17 }
 0x153   : > { %2161 = vmatmul.bf16.gmra.mxu0 %v2084_v14 }
 0x154   : > { %v1928_v50 = vsel %vm1884_vm2, %v1918_v37, %v1927_v36  ;;  %v1933_v37 = vshll.u32 %v3795_v63, 16 }
 0x155   : > { %v1248_v16 = vpop.f32.mrf.mxu3  ;;  %v1058_v58 = vpop.f32.mrf.mxu2 }
 0x156   : > { %v1091_v6 = vadd.f32 %v1058_v58, %v926_v3 }
 0x158   : > { %v928_v24 = vpop.f32.mrf.mxu1  ;;  %v1278_v44 = vadd.f32 %v1245_v15, %v1091_v6  ;;  %v1440_v34 = vpop.f32.mrf.mxu0  ;;  %v1930_v6 = vshrl.u32 %v3795_v63, 16 }
 0x159   : > { %v929_v48 = vadd.f32 %v928_v24, %v827_v5 }
 0x15a   : > { %v3790_v25 = vadd.f32 %v1440_v34, %v1278_v44  ;;  %1780 = vmatmul.bf16.gmra.mxu2 %v1700_v9  ;;  %v1932_v51 = vrot.slane %v1930_v6, 2 }
 0x15b   : > { %1593 = vmatmul.bf16.gmra.mxu1 %v3605_v49  ;;  %v2086_v49 = vsel %vm2079_vm3, %v2083_v40, %v2085_v31 }
 0x15d   : > { %v1250_v46 = vpop.f32.mrf.mxu3  ;;  %v1061_v41 = vpop.f32.mrf.mxu2 }
 0x15e   : > { %v1092_v45 = vadd.f32 %v1061_v41, %v929_v48  ;;  %v1935_v48 = vrot.slane %v1933_v37, 3 }
 0x160   : > { %v930_v3 = vpop.f32.mrf.mxu1  ;;  %v1279_v14 = vadd.f32 %v1248_v16, %v1092_v45  ;;  %v1443_v15 = vpop.f32.mrf.mxu0  ;;  %v1701_v16 = vrot.slane %v2960_v62, 2  ;;  %v1936_v45 = vor.u32 %v1935_v48, %v1932_v51 }
 0x161   : > { %v931_v5 = vadd.f32 %v930_v3, %v829_v2  ;;  %v2814_v3 = vld [vmem:[#allocation2 + $0x38] sm:$0xf] }
 0x162   : > { %2025 = vmatmul.bf16.gmra.mxu3 %v1928_v50  ;;  %v3797_v47 = vadd.f32 %v1443_v15, %v1279_v14  ;;  %v1702_v9 = vsel %vm1506_vm0, %v1699_v56, %v1701_v16  ;;  %v2975_v14 = vld [vmem:[#allocation2 + $0x38] sm:$0x10] }
 0x163   : > { %2166 = vmatmul.bf16.gmra.mxu0 %v2086_v49  ;;  %v3809_v6 = vor.u32 %v2975_v14, %v2814_v3 }
 0x165   : > { %v1253_v58 = vpop.f32.mrf.mxu3  ;;  %v1063_v24 = vpop.f32.mrf.mxu2 }
 0x166   : > { %v1093_v44 = vadd.f32 %v1063_v24, %v931_v5  ;;  %v1937_v5 = vsel %vm1884_vm2, %v1927_v36, %v1936_v45 }
 0x168   : > { %v933_v34 = vpop.f32.mrf.mxu1  ;;  %v1280_v35 = vadd.f32 %v1250_v46, %v1093_v44  ;;  %v1445_v17 = vpop.f32.mrf.mxu0  ;;  %v2087_v46 = vrot.slane %v3782_v29, 3  ;;  %v1939_v44 = vshrl.u32 %v3809_v6, 16  ;;  %v1942_v29 = vshll.u32 %v3809_v6, 16 }
 0x169   : > { %v934_v2 = vadd.f32 %v933_v34, %v3744_v27 }
 0x16a   : > { %v3804_v41 = vadd.f32 %v1445_v17, %v1280_v35  ;;  %1785 = vmatmul.bf16.gmra.mxu2 %v1702_v9  ;;  %v1941_v51 = vrot.slane %v1939_v44, 2  ;;  %v1944_v48 = vrot.slane %v1942_v29, 3 }
 0x16b   : > { %1598 = vmatmul.bf16.gmra.mxu1 %v3612_v33  ;;  %v2088_v33 = vsel %vm2079_vm3, %v2085_v31, %v2087_v46 }
 0x16d   : > { %v1255_v40 = vpop.f32.mrf.mxu3  ;;  %v1066_v50 = vpop.f32.mrf.mxu2 }
 0x16e   : > { %v1094_v15 = vadd.f32 %v1066_v50, %v934_v2  ;;  %v1945_v50 = vor.u32 %v1944_v48, %v1941_v51 }
 0x170   : > { %v935_v62 = vpop.f32.mrf.mxu1  ;;  %v1281_v49 = vadd.f32 %v1253_v58, %v1094_v15  ;;  %v1448_v27 = vpop.f32.mrf.mxu0  ;;  %v1946_v15 = vsel %vm1884_vm2, %v1936_v45, %v1945_v50 }
 0x171   : > { %v936_v56 = vadd.f32 %v935_v62, %v3751_v54  ;;  %v1704_v54 = vsel %vm1506_vm0, %v1701_v16, %v1703_v11 }
 0x172   : > { %2030 = vmatmul.bf16.gmra.mxu3 %v1937_v5  ;;  %v3812_v37 = vadd.f32 %v1448_v27, %v1281_v49 }
 0x173   : > { %2171 = vmatmul.bf16.gmra.mxu0 %v2088_v33 }
 0x175   : > { %v1258_v24 = vpop.f32.mrf.mxu3  ;;  %v1068_v34 = vpop.f32.mrf.mxu2 }
 0x176   : > { %v1095_v36 = vadd.f32 %v1068_v34, %v936_v56 }
 0x178   : > { %v938_v35 = vpop.f32.mrf.mxu1  ;;  %v1282_v58 = vadd.f32 %v1255_v40, %v1095_v36  ;;  %v1450_v17 = vpop.f32.mrf.mxu0  ;;  %v2089_v40 = vrot.slane %v3795_v63, 3 }
 0x179   : > { %v939_v2 = vadd.f32 %v938_v35, %v3761_v32 }
 0x17a   : > { %v3821_v31 = vadd.f32 %v1450_v17, %v1282_v58  ;;  %1790 = vmatmul.bf16.gmra.mxu2 %v1704_v54  ;;  %v2090_v16 = vsel %vm2079_vm3, %v2087_v46, %v2089_v40  ;;  %v2091_v46 = vrot.slane %v3809_v6, 3 }
 0x17b   : > { %1603 = vmatmul.bf16.gmra.mxu1 %v3623_v7 }
 0x17c   : > { %v2092_v17 = vsel %vm2079_vm3, %v2089_v40, %v2091_v46 }
 0x17d   : > { %v1260_v9 = vpop.f32.mrf.mxu3  ;;  %v1071_v3 = vpop.f32.mrf.mxu2 }
 0x17e   : > { %v1096_v14 = vadd.f32 %v1071_v3, %v939_v2 }
 0x180   : > { %v940_v5 = vpop.f32.mrf.mxu1  ;;  %v1283_v62 = vadd.f32 %v1258_v24, %v1096_v14  ;;  %v1453_v32 = vpop.f32.mrf.mxu0 }
 0x181   : > { %v941_v4 = vadd.f32 %v940_v5, %v3768_v23 }
 0x182   : > { %2035 = vmatmul.bf16.gmra.mxu3 %v1946_v15  ;;  %v3827_v11 = vadd.f32 %v1453_v32, %v1283_v62 }
 0x183   : > { %2176 = vmatmul.bf16.gmra.mxu0 %v2090_v16 }
 0x185   : > { %v1263_v7 = vpop.f32.mrf.mxu3  ;;  %v1073_v49 = vpop.f32.mrf.mxu2 }
 0x186   : > { %v1097_v27 = vadd.f32 %v1073_v49, %v941_v4 }
 0x188   : > { %v943_v56 = vpop.f32.mrf.mxu1  ;;  %v1284_v33 = vadd.f32 %v1260_v9, %v1097_v27  ;;  %v1455_v44 = vpop.f32.mrf.mxu0 }
 0x189   : > { %v944_v45 = vadd.f32 %v943_v56, %v3748_v57 }
 0x18a   : > { %v3830_v63 = vadd.f32 %v1455_v44, %v1284_v33  ;;  %1795 = vmatmul.bf16.gmra.mxu2 %v3650_v28 }
 0x18b   : > { %1608 = vmatmul.bf16.gmra.mxu1 %v3642_v13 }
 0x18d   : > { %v1265_v23 = vpop.f32.mrf.mxu3  ;;  %v1076_v24 = vpop.f32.mrf.mxu2 }
 0x18e   : > { %v1098_v29 = vadd.f32 %v1076_v24, %v944_v45 }
 0x190   : > { %v945_v34 = vpop.f32.mrf.mxu1  ;;  %v1285_v36 = vadd.f32 %v1263_v7, %v1098_v29  ;;  %v1458_v35 = vpop.f32.mrf.mxu0 }
 0x191   : > { %v946_v28 = vadd.f32 %v945_v34, %v3759_v8 }
 0x192   : > { %2040 = vmatmul.bf16.gmra.mxu3 %v1945_v50  ;;  %v3836_v58 = vadd.f32 %v1458_v35, %v1285_v36 }
 0x193   : > { %2181 = vmatmul.bf16.gmra.mxu0 %v2092_v17 }
 0x195   : > { %v1268_v51 = vpop.f32.mrf.mxu3  ;;  %v1078_v13 = vpop.f32.mrf.mxu2 }
 0x196   : > { %v1099_v48 = vadd.f32 %v1078_v13, %v946_v28 }
 0x198   : > { %v948_v57 = vpop.f32.mrf.mxu1  ;;  %v1286_v2 = vadd.f32 %v1265_v23, %v1099_v48  ;;  %v1460_v54 = vpop.f32.mrf.mxu0 }
 0x199   : > { %v949_v6 = vadd.f32 %v948_v57, %v3765_v12 }
 0x19a   : > { %v3840_v9 = vadd.f32 %v1460_v54, %v1286_v2  ;;  %1800 = vmatmul.bf16.gmra.mxu2 %v1705_v1 }
 0x19b   : > { %1613 = vmatmul.bf16.gmra.mxu1 %v1518_v10 }
 0x19d   : > { %v1270_v50 = vpop.f32.mrf.mxu3  ;;  %v1081_v3 = vpop.f32.mrf.mxu2 }
 0x19e   : > { %v1100_v14 = vadd.f32 %v1081_v3, %v949_v6 }
 0x1a0   : > { %v950_v8 = vpop.f32.mrf.mxu1  ;;  %v1287_v40 = vadd.f32 %v1268_v51, %v1100_v14  ;;  %v1463_v15 = vpop.f32.mrf.mxu0 }
 0x1a1   : > { %v951_v62 = vadd.f32 %v950_v8, %v3774_v52 }
 0x1a2   : > { %v3847_v5 = vadd.f32 %v1463_v15, %v1287_v40 }
 0x1a3   : > { %2186 = vmatmul.bf16.gmra.mxu0 %v2091_v46 }
 0x1a5   : > { %v1273_v32 = vpop.f32.mrf.mxu3  ;;  %v1083_v4 = vpop.f32.mrf.mxu2 }
 0x1a6   : > { %v1101_v18 = vadd.f32 %v1083_v4, %v951_v62 }
 0x1a8   : > { %v953_v1 = vpop.f32.mrf.mxu1  ;;  %v1288_v16 = vadd.f32 %v1270_v50, %v1101_v18  ;;  %v1465_v55 = vpop.f32.mrf.mxu0 }
 0x1a9   : > { %v954_v12 = vadd.f32 %v953_v1, %v3755_v42 }
 0x1aa   : > { %v3850_v10 = vadd.f32 %v1465_v55, %v1288_v16 }
 0x1ad   : > { %v1275_v7 = vpop.f32.mrf.mxu3  ;;  %v1086_v49 = vpop.f32.mrf.mxu2 }
 0x1ae   : > { %v1102_v27 = vadd.f32 %v1086_v49, %v954_v12 }
 0x1b0   : > { %v955_v56 = vpop.f32.mrf.mxu1  ;;  %v1289_v33 = vadd.f32 %v1273_v32, %v1102_v27  ;;  %v1468_v44 = vpop.f32.mrf.mxu0 }
 0x1b2   : > { %v3853_v45 = vadd.f32 %v1468_v44, %v1289_v33 }
 0x1b5   : > { %v2011_v23 = vpop.f32.mrf.mxu3  ;;  %v1088_v52 = vpop.f32.mrf.mxu2 }
 0x1b8   : > { %v1470_v24 = vpop.f32.mrf.mxu0  ;;  %v1584_v29 = vpop.f32.mrf.mxu1 }
 0x1b9   : > { %v1618_v46 = vadd.f32 %v1584_v29, %v3784_v30 }
 0x1bd   : > { %v2013_v34 = vpop.f32.mrf.mxu3  ;;  %v1771_v36 = vpop.f32.mrf.mxu2 }
 0x1be   : > { %v1805_v35 = vadd.f32 %v1771_v36, %v1618_v46 }
 0x1c0   : > { %v1586_v17 = vpop.f32.mrf.mxu1  ;;  %v2157_v42 = vpop.f32.mrf.mxu0  ;;  %v2045_v28 = vadd.f32 %v2011_v23, %v1805_v35 }
 0x1c1   : > { %v1619_v51 = vadd.f32 %v1586_v17, %v3790_v25 }
 0x1c2   : > { %v2191_v57 = vadd.f32 %v2157_v42, %v2045_v28 }
 0x1c4   : > { %v2230_v3 = vmul.f32 %v2191_v57, %v3394_v22 }
 0x1c5   : > { %v2016_v13 = vpop.f32.mrf.mxu3  ;;  %v1773_v48 = vpop.f32.mrf.mxu2 }
 0x1c6   : > { %v1806_v2 = vadd.f32 %v1773_v48, %v1619_v51  ;;  %v2263_v62 = vmul.f32 %v2230_v3, %v2191_v57 }
 0x1c8   : > { %v1589_v54 = vpop.f32.mrf.mxu1  ;;  %v2046_v6 = vadd.f32 %v2013_v34, %v1806_v2  ;;  %v2159_v50 = vpop.f32.mrf.mxu0 }
 0x1c9   : > { %v1620_v30 = vadd.f32 %v1589_v54, %v3797_v47 }
 0x1ca   : > { %v2192_v14 = vadd.f32 %v2159_v50, %v2046_v6 }
 0x1cc   : > { %v3023_v25 = vpack.c.bf16 %v2192_v14, %v2191_v57  ;;  %v2231_v8 = vmul.f32 %v2192_v14, %v3392_v19 }
 0x1cd   : > { %v2018_v40 = vpop.f32.mrf.mxu3  ;;  %v1776_v15 = vpop.f32.mrf.mxu2 }
 0x1ce   : > { %3024 = vst [vmem:[%s3863_s11] sm:$0xff] %v3023_v25   ;;  %v2243_v32 = vadd.f32 %v2231_v8, %v2230_v3  ;;  %v2264_v4 = vmul.f32 %v2231_v8, %v2192_v14  ;;  %v1807_v22 = vadd.f32 %v1776_v15, %v1620_v30 }
 0x1d0   : > { %v2276_v18 = vadd.f32 %v2264_v4, %v2263_v62  ;;  %v1591_v1 = vpop.f32.mrf.mxu1  ;;  %v2047_v16 = vadd.f32 %v2016_v13, %v1807_v22  ;;  %v2162_v55 = vpop.f32.mrf.mxu0 }
 0x1d1   : > { %v1621_v7 = vadd.f32 %v1591_v1, %v3804_v41 }
 0x1d2   : > { %v2193_v12 = vadd.f32 %v2162_v55, %v2047_v16 }
 0x1d4   : > { %v2232_v49 = vmul.f32 %v2193_v12, %v3230_v26 }
 0x1d5   : > { %v2021_v47 = vpop.f32.mrf.mxu3  ;;  %v1778_v27 = vpop.f32.mrf.mxu2 }
 0x1d6   : > { %v2244_v19 = vadd.f32 %v2243_v32, %v2232_v49  ;;  %v2265_v56 = vmul.f32 %v2232_v49, %v2193_v12  ;;  %v1808_v33 = vadd.f32 %v1778_v27, %v1621_v7 }
 0x1d8   : > { %v2277_v44 = vadd.f32 %v2276_v18, %v2265_v56  ;;  %v1594_v23 = vpop.f32.mrf.mxu1  ;;  %v2048_v52 = vadd.f32 %v2018_v40, %v1808_v33  ;;  %v2164_v24 = vpop.f32.mrf.mxu0 }
 0x1d9   : > { %v1622_v46 = vadd.f32 %v1594_v23, %v3812_v37 }
 0x1da   : > { %v2194_v29 = vadd.f32 %v2164_v24, %v2048_v52 }
 0x1dc   : > { %v3028_v34 = vpack.c.bf16 %v2194_v29, %v2193_v12  ;;  %v2233_v36 = vmul.f32 %v2194_v29, %v3244_v43 }
 0x1dd   : > { %v2023_v35 = vpop.f32.mrf.mxu3  ;;  %v1781_v41 = vpop.f32.mrf.mxu2 }
 0x1de   : > { %3058 = vst [vmem:[%s3863_s11 + $0x8] sm:$0xff] %v3028_v34   ;;  %v2245_v26 = vadd.f32 %v2244_v19, %v2233_v36  ;;  %v2266_v17 = vmul.f32 %v2233_v36, %v2194_v29  ;;  %v1809_v42 = vadd.f32 %v1781_v41, %v1622_v46 }
 0x1e0   : > { %v2278_v28 = vadd.f32 %v2277_v44, %v2266_v17  ;;  %v1596_v51 = vpop.f32.mrf.mxu1  ;;  %v2049_v13 = vadd.f32 %v2021_v47, %v1809_v42  ;;  %v2167_v48 = vpop.f32.mrf.mxu0 }
 0x1e1   : > { %v1623_v2 = vadd.f32 %v1596_v51, %v3821_v31 }
 0x1e2   : > { %v2195_v57 = vadd.f32 %v2167_v48, %v2049_v13 }
 0x1e4   : > { %v2234_v54 = vmul.f32 %v2195_v57, %v3347_v38 }
 0x1e5   : > { %v2026_v37 = vpop.f32.mrf.mxu3  ;;  %v1783_v6 = vpop.f32.mrf.mxu2 }
 0x1e6   : > { %v2246_v50 = vadd.f32 %v2245_v26, %v2234_v54  ;;  %v2267_v43 = vmul.f32 %v2234_v54, %v2195_v57  ;;  %v1810_v3 = vadd.f32 %v1783_v6, %v1623_v2 }
 0x1e8   : > { %v2279_v14 = vadd.f32 %v2278_v28, %v2267_v43  ;;  %v1599_v30 = vpop.f32.mrf.mxu1  ;;  %v2050_v25 = vadd.f32 %v2023_v35, %v1810_v3  ;;  %v2169_v8 = vpop.f32.mrf.mxu0 }
 0x1e9   : > { %v1624_v15 = vadd.f32 %v1599_v30, %v3827_v11 }
 0x1ea   : > { %v2196_v40 = vadd.f32 %v2169_v8, %v2050_v25 }
 0x1ec   : > { %v3033_v62 = vpack.c.bf16 %v2196_v40, %v2195_v57  ;;  %v2235_v32 = vmul.f32 %v2196_v40, %v3265_v0 }
 0x1ed   : > { %v2028_v4 = vpop.f32.mrf.mxu3  ;;  %v1786_v31 = vpop.f32.mrf.mxu2 }
 0x1ee   : > { %3059 = vst [vmem:[%s3863_s11 + $0x10] sm:$0xff] %v3033_v62   ;;  %v2247_v38 = vadd.f32 %v2246_v50, %v2235_v32  ;;  %v2268_v22 = vmul.f32 %v2235_v32, %v2196_v40  ;;  %v1811_v18 = vadd.f32 %v1786_v31, %v1624_v15 }
 0x1f0   : > { %v2280_v1 = vadd.f32 %v2279_v14, %v2268_v22  ;;  %v1601_v16 = vpop.f32.mrf.mxu1  ;;  %v2051_v55 = vadd.f32 %v2026_v37, %v1811_v18  ;;  %v2172_v12 = vpop.f32.mrf.mxu0 }
 0x1f1   : > { %v1625_v49 = vadd.f32 %v1601_v16, %v3830_v63 }
 0x1f2   : > { %v2197_v7 = vadd.f32 %v2172_v12, %v2051_v55 }
 0x1f4   : > { %v2236_v47 = vmul.f32 %v2197_v7, %v3290_v21 }
 0x1f5   : > { %v2031_v11 = vpop.f32.mrf.mxu3  ;;  %v1788_v27 = vpop.f32.mrf.mxu2 }
 0x1f6   : > { %v2248_v19 = vadd.f32 %v2247_v38, %v2236_v47  ;;  %v2269_v0 = vmul.f32 %v2236_v47, %v2197_v7  ;;  %v1812_v56 = vadd.f32 %v1788_v27, %v1625_v49 }
 0x1f8   : > { %v2281_v33 = vadd.f32 %v2280_v1, %v2269_v0  ;;  %v1604_v44 = vpop.f32.mrf.mxu1  ;;  %v2052_v23 = vadd.f32 %v2028_v4, %v1812_v56  ;;  %v2174_v52 = vpop.f32.mrf.mxu0 }
 0x1f9   : > { %v1626_v29 = vadd.f32 %v1604_v44, %v3836_v58 }
 0x1fa   : > { %v2198_v24 = vadd.f32 %v2174_v52, %v2052_v23 }
 0x1fc   : > { %v3038_v46 = vpack.c.bf16 %v2198_v24, %v2197_v7  ;;  %v2237_v34 = vmul.f32 %v2198_v24, %v3319_v60 }
 0x1fd   : > { %v2033_v36 = vpop.f32.mrf.mxu3  ;;  %v1791_v63 = vpop.f32.mrf.mxu2 }
 0x1fe   : > { %3060 = vst [vmem:[%s3863_s11 + $0x18] sm:$0xff] %v3038_v46   ;;  %v2249_v21 = vadd.f32 %v2248_v19, %v2237_v34  ;;  %v2270_v35 = vmul.f32 %v2237_v34, %v2198_v24  ;;  %v1813_v41 = vadd.f32 %v1791_v63, %v1626_v29 }
 0x200   : > { %v2282_v26 = vadd.f32 %v2281_v33, %v2270_v35  ;;  %v1606_v17 = vpop.f32.mrf.mxu1  ;;  %v2053_v42 = vadd.f32 %v2031_v11, %v1813_v41  ;;  %v2177_v28 = vpop.f32.mrf.mxu0 }
 0x201   : > { %v1627_v13 = vadd.f32 %v1606_v17, %v3840_v9 }
 0x202   : > { %v2199_v51 = vadd.f32 %v2177_v28, %v2053_v42 }
 0x204   : > { %v2238_v48 = vmul.f32 %v2199_v51, %v3288_v20 }
 0x205   : > { %v2036_v58 = vpop.f32.mrf.mxu3  ;;  %v1793_v57 = vpop.f32.mrf.mxu2 }
 0x206   : > { %v2250_v2 = vadd.f32 %v2249_v21, %v2238_v48  ;;  %v2271_v60 = vmul.f32 %v2238_v48, %v2199_v51  ;;  %v1814_v54 = vadd.f32 %v1793_v57, %v1627_v13 }
 0x208   : > { %v2283_v37 = vadd.f32 %v2282_v26, %v2271_v60  ;;  %v1609_v6 = vpop.f32.mrf.mxu1  ;;  %v2054_v50 = vadd.f32 %v2033_v36, %v1814_v54  ;;  %v2179_v43 = vpop.f32.mrf.mxu0 }
 0x209   : > { %v1628_v14 = vadd.f32 %v1609_v6, %v3847_v5 }
 0x20a   : > { %v2200_v3 = vadd.f32 %v2179_v43, %v2054_v50 }
 0x20c   : > { %v3043_v30 = vpack.c.bf16 %v2200_v3, %v2199_v51  ;;  %v2239_v25 = vmul.f32 %v2200_v3, %v3317_v59 }
 0x20d   : > { %v2038_v8 = vpop.f32.mrf.mxu3  ;;  %v1796_v9 = vpop.f32.mrf.mxu2 }
 0x20e   : > { %3061 = vst [vmem:[%s3863_s11 + $0x20] sm:$0xff] %v3043_v30   ;;  %v2251_v20 = vadd.f32 %v2250_v2, %v2239_v25  ;;  %v2272_v40 = vmul.f32 %v2239_v25, %v2200_v3  ;;  %v1815_v15 = vadd.f32 %v1796_v9, %v1628_v14 }
 0x210   : > { %v2284_v62 = vadd.f32 %v2283_v37, %v2272_v40  ;;  %v1611_v32 = vpop.f32.mrf.mxu1  ;;  %v2055_v4 = vadd.f32 %v2036_v58, %v1815_v15  ;;  %v2182_v31 = vpop.f32.mrf.mxu0 }
 0x211   : > { %v1629_v22 = vadd.f32 %v1611_v32, %v3850_v10 }
 0x212   : > { %v2201_v38 = vadd.f32 %v2182_v31, %v2055_v4 }
 0x214   : > { %v2240_v18 = vmul.f32 %v2201_v38, %v3349_v39 }
 0x215   : > { %v2041_v5 = vpop.f32.mrf.mxu3  ;;  %v1798_v1 = vpop.f32.mrf.mxu2 }
 0x216   : > { %v2252_v16 = vadd.f32 %v2251_v20, %v2240_v18  ;;  %v2273_v59 = vmul.f32 %v2240_v18, %v2201_v38  ;;  %v1816_v55 = vadd.f32 %v1798_v1, %v1629_v22 }
 0x218   : > { %v2285_v12 = vadd.f32 %v2284_v62, %v2273_v59  ;;  %v1614_v7 = vpop.f32.mrf.mxu1  ;;  %v2056_v49 = vadd.f32 %v2038_v8, %v1816_v55  ;;  %v2184_v47 = vpop.f32.mrf.mxu0 }
 0x219   : > { %v1630_v27 = vadd.f32 %v1614_v7, %v3853_v45 }
 0x21a   : > { %v2202_v11 = vadd.f32 %v2184_v47, %v2056_v49 }
 0x21c   : > { %v3048_v19 = vpack.c.bf16 %v2202_v11, %v2201_v38  ;;  %v2241_v0 = vmul.f32 %v2202_v11, %v3313_v53 }
 0x21d   : > { %v2043_v10 = vpop.f32.mrf.mxu3  ;;  %v1801_v56 = vpop.f32.mrf.mxu2 }
 0x21e   : > { %3062 = vst [vmem:[%s3863_s11 + $0x28] sm:$0xff] %v3048_v19   ;;  %v2253_v39 = vadd.f32 %v2252_v16, %v2241_v0  ;;  %v2274_v33 = vmul.f32 %v2241_v0, %v2202_v11  ;;  %v1817_v44 = vadd.f32 %v1801_v56, %v1630_v27 }
 0x220   : > { %v2286_v23 = vadd.f32 %v2285_v12, %v2274_v33  ;;  %v1616_v52 = vpop.f32.mrf.mxu1  ;;  %v2057_v24 = vadd.f32 %v2041_v5, %v1817_v44  ;;  %v2187_v29 = vpop.f32.mrf.mxu0 }
 0x222   : > { %v2203_v46 = vadd.f32 %v2187_v29, %v2057_v24 }
 0x224   : > { %v2216_v34 = vpack.c.bf16 %v2203_v46, %v2203_v46  ;;  %v2242_v36 = vmul.f32 %v2203_v46, %v3436_v61 }
 0x225   : > { %v1803_v63 = vpop.f32.mrf.mxu2 }
 0x226   : > { %2229 = vst [vmem:[%s3863_s11 + $0x30] sm:$0x3] %v2216_v34  ;;  %v2255_v45 = vsel %vm616_vm13, %v2242_v36, 0.0  ;;  %v2275_v53 = vmul.f32 %v2242_v36, %v2203_v46 }
 0x227   : > { %v2256_v21 = vadd.f32 %v2255_v45, %v2253_v39 }
 0x228   : > { %v2287_v35 = vsel %vm616_vm13, %v2275_v53, 0.0  ;;  %v2189_v41 = vpop.f32.mrf.mxu0 }
 0x229   : > { %v2257_v26 = vrot.slane %v2256_v21, 4  ;;  %v2288_v17 = vadd.f32 %v2287_v35, %v2286_v23 }
 0x22b   : > { %v2258_v42 = vadd.f32 %v2257_v26, %v2256_v21  ;;  %v2289_v28 = vrot.slane %v2288_v17, 4 }
 0x22d   : > { %v2259_v51 = vrot.slane %v2258_v42, 2  ;;  %v2290_v13 = vadd.f32 %v2289_v28, %v2288_v17 }
 0x22f   : > { %v2260_v48 = vadd.f32 %v2259_v51, %v2258_v42  ;;  %v2291_v58 = vrot.slane %v2290_v13, 2 }
 0x231   : > { %v2261_v57 = vrot.slane %v2260_v48, 1  ;;  %v2292_v61 = vadd.f32 %v2291_v58, %v2290_v13 }
 0x233   : > { %v2293_v2 = vrot.slane %v2292_v61, 1  ;;  %v2262_v60 = vadd.f32 %v2261_v57, %v2260_v48 }
 0x235   : > { %v2294_v54 = vadd.f32 %v2293_v2, %v2292_v61 }
 0x237   : > { %v2296_v37 = vsel %vm2295_vm4, %v2262_v60, %v2294_v54 }
 0x238   : > { %2297 = vst [vmem:[%s262_s14] sm:$0x3] %v2296_v37 }
 0x239 PF: > { %s17_s21 = sadd.s32 1, %s3108_s21  }
 0x23a   : > { %p14_p4 = scmp.ge.s32.totalorder %s17_s21, 4  }
 0x23c   :  { %16 = sbr.rel (!%p14_p4) target bundleno = 1 (0x1), region = 90 }

</bundles_post_ra>
